<compile_context>
chip_gen: v5e
topology: v5e:2x2
jax: 0.10.0
libtpu: 0.0.40
codegen_flags: <defaults>
</compile_context>

<pallas_src>
import jax
import jax.numpy as jnp
from jax.experimental import pallas as pl
from jax.experimental.pallas import tpu as pltpu

IN_F, HID_F, OUT_F = 2, 10, 2     # fc1: 2->10, fc2: 10->10, fc3: 10->2
LANE = 128                        # TPU lane width
SUBLANE = 8                       # f32 sublanes per vreg


def _round_up(n, m):
    return -(-n // m) * m


def _mlp_kernel(w1_ref, b1_ref, w2_ref, b2_ref, w3_ref, b3_ref, x_ref, o_ref):
    """x_ref: [IN_F, R, 128] tile; o_ref: [OUT_F, R, 128] tile.

    Weights are PyTorch-layout [out, in] in SMEM; biases [out] in SMEM.
    """
    # Hoist every weight/bias scalar out of the chunk loop: one SMEM read each
    # per kernel invocation (scalar slots, off the VALU critical path).
    w1 = [[w1_ref[j, k] for k in range(IN_F)] for j in range(HID_F)]
    b1 = [b1_ref[j] for j in range(HID_F)]
    w2 = [[w2_ref[j, k] for k in range(HID_F)] for j in range(HID_F)]
    b2 = [b2_ref[j] for j in range(HID_F)]
    w3 = [[w3_ref[j, k] for k in range(HID_F)] for j in range(OUT_F)]
    b3 = [b3_ref[j] for j in range(OUT_F)]

    # Process the tile one vreg-row-chunk (8 sublanes x 128 lanes) at a time so
    # intermediate activations (10 + 10 rows) stay in registers, no spilling.
    n_chunks = x_ref.shape[1] // SUBLANE
    for c in range(n_chunks):
        r0 = c * SUBLANE
        xk = [x_ref[k, r0:r0 + SUBLANE, :] for k in range(IN_F)]  # (8,128) each

        # fc1 + ReLU : h1[j] = relu(sum_k w1[j,k] * x[k] + b1[j])
        h1 = []
        for j in range(HID_F):
            acc = xk[0] * w1[j][0]
            for k in range(1, IN_F):
                acc = acc + xk[k] * w1[j][k]
            h1.append(jnp.maximum(acc + b1[j], 0.0))

        # fc2 + ReLU
        h2 = []
        for j in range(HID_F):
            acc = h1[0] * w2[j][0]
            for k in range(1, HID_F):
                acc = acc + h1[k] * w2[j][k]
            h2.append(jnp.maximum(acc + b2[j], 0.0))

        # fc3 (no activation) -> dense (8,128) stores into the output tile
        for j in range(OUT_F):
            acc = h2[0] * w3[j][0]
            for k in range(1, HID_F):
                acc = acc + h2[k] * w3[j][k]
            o_ref[j, r0:r0 + SUBLANE, :] = acc + b3[j]


def testnet_forward(x, params, *, r_tile=128):
    """Fused TestNet forward.

    x: [B, 2] float32.
    params: PyTorch-layout weights: w{i} [out, in], b{i} [out] (all float32).
    r_tile: batch-row tile (rows of 128 batch elements) per grid step.
    """
    x = x.astype(jnp.float32)
    B = x.shape[0]

    # ---- layout plumbing: [B, feat] -> [feat, rows, 128] (batch on lanes) ----
    rows = _round_up(B, LANE) // LANE
    r_tile = max(SUBLANE, min(_round_up(r_tile, SUBLANE), _round_up(rows, SUBLANE)))
    rows_p = _round_up(rows, r_tile)
    Bp = rows_p * LANE
    xt = jnp.zeros((IN_F, Bp), jnp.float32).at[:, :B].set(x.T)
    xt = xt.reshape(IN_F, rows_p, LANE)

    grid = (rows_p // r_tile,)

    smem_spec = pl.BlockSpec(memory_space=pltpu.MemorySpace.SMEM)  # tiny, resident
    x_spec = pl.BlockSpec((IN_F, r_tile, LANE), lambda i: (0, i, 0))
    o_spec = pl.BlockSpec((OUT_F, r_tile, LANE), lambda i: (0, i, 0))

    out = pl.pallas_call(
        _mlp_kernel,
        out_shape=jax.ShapeDtypeStruct((OUT_F, rows_p, LANE), jnp.float32),
        grid=grid,
        in_specs=[smem_spec] * 6 + [x_spec],
        out_specs=o_spec,
        compiler_params=pltpu.CompilerParams(
            dimension_semantics=("parallel",),      # shard batch tiles across TCs (v7x)
            vmem_limit_bytes=32 * 1024 * 1024,      # explicit; tiles sized for v7x 64 MiB
        ),
    )(params["w1"], params["b1"], params["w2"], params["b2"],
      params["w3"], params["b3"], xt)

    # Undo layout plumbing + drop padding.
    return out.reshape(OUT_F, Bp)[:, :B].T


def init_params(key):
    """Deterministic init matching TestNet's layer shapes (PyTorch [out,in] layout)."""
    k1, k2, k3, k4, k5, k6 = jax.random.split(key, 6)
    w1 = jax.random.normal(k1, (HID_F, IN_F), jnp.float32) * 0.5
    b1 = jax.random.normal(k2, (HID_F,), jnp.float32) * 0.1
    w2 = jax.random.normal(k3, (HID_F, HID_F), jnp.float32) * 0.3
    b2 = jax.random.normal(k4, (HID_F,), jnp.float32) * 0.1
    w3 = jax.random.normal(k5, (OUT_F, HID_F), jnp.float32) * 0.3
    b3 = jax.random.normal(k6, (OUT_F,), jnp.float32) * 0.1
    return {"w1": w1, "b1": b1, "w2": w2, "b2": b2, "w3": w3, "b3": b3}


if __name__ == "__main__":
    key = jax.random.PRNGKey(0)
    kx, kp = jax.random.split(key)
    params = init_params(kp)

    def ref_fn(xa):
        h = jnp.maximum(xa @ params["w1"].T + params["b1"], 0.0)
        h = jnp.maximum(h @ params["w2"].T + params["b2"], 0.0)
        return h @ params["w3"].T + params["b3"]

    # Small batch (single grid step, heavily padded tail).
    x_small = jax.random.normal(kx, (8, IN_F), jnp.float32)
    out_small = testnet_forward(x_small, params)
    jax.block_until_ready(out_small)
    assert out_small.shape == (8, OUT_F)
    assert jnp.allclose(out_small, ref_fn(x_small), atol=1e-4, rtol=1e-4), \
        "mismatch vs reference (small batch)"

    # Larger batch: exercises multi-step batch grid, multi-chunk inner loop,
    # and tail padding (B=5000 -> 40 rows -> padded to 48 rows, grid=(3,)).
    x_big = jax.random.normal(kx, (5000, IN_F), jnp.float32)
    out_big = testnet_forward(x_big, params, r_tile=16)
    jax.block_until_ready(out_big)
    assert out_big.shape == (5000, OUT_F)
    assert jnp.allclose(out_big, ref_fn(x_big), atol=1e-4, rtol=1e-4), \
        "mismatch vs reference (large batch)"

    print("KERNEL_OK")
</pallas_src>

<mosaic_0001>
module attributes {stable_mosaic.version = 11 : i64} {
  func.func @_mlp_kernel(%arg0: i32, %arg1: memref<10x2xf32, #tpu.memory_space<smem>>, %arg2: memref<10xf32, #tpu.memory_space<smem>>, %arg3: memref<10x10xf32, #tpu.memory_space<smem>>, %arg4: memref<10xf32, #tpu.memory_space<smem>>, %arg5: memref<2x10xf32, #tpu.memory_space<smem>>, %arg6: memref<2xf32, #tpu.memory_space<smem>>, %arg7: memref<2x8x128xf32, #tpu.memory_space<vmem>>, %arg8: memref<2x8x128xf32, #tpu.memory_space<vmem>>) attributes {dimension_semantics = [#tpu.dimension_semantics<parallel>], iteration_bounds = array<i64: 1>, scalar_prefetch = 0 : i64, scratch_operands = 0 : i64, tpu.core_type = #tpu.core_type<tc>, window_params = [{transform_indices = @transform_0, window_bounds = array<i64: 10, 2>}, {transform_indices = @transform_1, window_bounds = array<i64: 10>}, {transform_indices = @transform_2, window_bounds = array<i64: 10, 10>}, {transform_indices = @transform_3, window_bounds = array<i64: 10>}, {transform_indices = @transform_4, window_bounds = array<i64: 2, 10>}, {transform_indices = @transform_5, window_bounds = array<i64: 2>}, {transform_indices = @transform_6, window_bounds = array<i64: 2, 8, 128>}, {transform_indices = @transform_7, window_bounds = array<i64: 2, 8, 128>}]} {
    %c0 = arith.constant 0 : index
    %c0_0 = arith.constant 0 : index
    %0 = memref.load %arg1[%c0, %c0_0] : memref<10x2xf32, #tpu.memory_space<smem>>
    %c0_1 = arith.constant 0 : index
    %c1 = arith.constant 1 : index
    %1 = memref.load %arg1[%c0_1, %c1] : memref<10x2xf32, #tpu.memory_space<smem>>
    %c1_2 = arith.constant 1 : index
    %c0_3 = arith.constant 0 : index
    %2 = memref.load %arg1[%c1_2, %c0_3] : memref<10x2xf32, #tpu.memory_space<smem>>
    %c1_4 = arith.constant 1 : index
    %c1_5 = arith.constant 1 : index
    %3 = memref.load %arg1[%c1_4, %c1_5] : memref<10x2xf32, #tpu.memory_space<smem>>
    %c2 = arith.constant 2 : index
    %c0_6 = arith.constant 0 : index
    %4 = memref.load %arg1[%c2, %c0_6] : memref<10x2xf32, #tpu.memory_space<smem>>
    %c2_7 = arith.constant 2 : index
    %c1_8 = arith.constant 1 : index
    %5 = memref.load %arg1[%c2_7, %c1_8] : memref<10x2xf32, #tpu.memory_space<smem>>
    %c3 = arith.constant 3 : index
    %c0_9 = arith.constant 0 : index
    %6 = memref.load %arg1[%c3, %c0_9] : memref<10x2xf32, #tpu.memory_space<smem>>
    %c3_10 = arith.constant 3 : index
    %c1_11 = arith.constant 1 : index
    %7 = memref.load %arg1[%c3_10, %c1_11] : memref<10x2xf32, #tpu.memory_space<smem>>
    %c4 = arith.constant 4 : index
    %c0_12 = arith.constant 0 : index
    %8 = memref.load %arg1[%c4, %c0_12] : memref<10x2xf32, #tpu.memory_space<smem>>
    %c4_13 = arith.constant 4 : index
    %c1_14 = arith.constant 1 : index
    %9 = memref.load %arg1[%c4_13, %c1_14] : memref<10x2xf32, #tpu.memory_space<smem>>
    %c5 = arith.constant 5 : index
    %c0_15 = arith.constant 0 : index
    %10 = memref.load %arg1[%c5, %c0_15] : memref<10x2xf32, #tpu.memory_space<smem>>
    %c5_16 = arith.constant 5 : index
    %c1_17 = arith.constant 1 : index
    %11 = memref.load %arg1[%c5_16, %c1_17] : memref<10x2xf32, #tpu.memory_space<smem>>
    %c6 = arith.constant 6 : index
    %c0_18 = arith.constant 0 : index
    %12 = memref.load %arg1[%c6, %c0_18] : memref<10x2xf32, #tpu.memory_space<smem>>
    %c6_19 = arith.constant 6 : index
    %c1_20 = arith.constant 1 : index
    %13 = memref.load %arg1[%c6_19, %c1_20] : memref<10x2xf32, #tpu.memory_space<smem>>
    %c7 = arith.constant 7 : index
    %c0_21 = arith.constant 0 : index
    %14 = memref.load %arg1[%c7, %c0_21] : memref<10x2xf32, #tpu.memory_space<smem>>
    %c7_22 = arith.constant 7 : index
    %c1_23 = arith.constant 1 : index
    %15 = memref.load %arg1[%c7_22, %c1_23] : memref<10x2xf32, #tpu.memory_space<smem>>
    %c8 = arith.constant 8 : index
    %c0_24 = arith.constant 0 : index
    %16 = memref.load %arg1[%c8, %c0_24] : memref<10x2xf32, #tpu.memory_space<smem>>
    %c8_25 = arith.constant 8 : index
    %c1_26 = arith.constant 1 : index
    %17 = memref.load %arg1[%c8_25, %c1_26] : memref<10x2xf32, #tpu.memory_space<smem>>
    %c9 = arith.constant 9 : index
    %c0_27 = arith.constant 0 : index
    %18 = memref.load %arg1[%c9, %c0_27] : memref<10x2xf32, #tpu.memory_space<smem>>
    %c9_28 = arith.constant 9 : index
    %c1_29 = arith.constant 1 : index
    %19 = memref.load %arg1[%c9_28, %c1_29] : memref<10x2xf32, #tpu.memory_space<smem>>
    %c0_30 = arith.constant 0 : index
    %20 = memref.load %arg2[%c0_30] : memref<10xf32, #tpu.memory_space<smem>>
    %c1_31 = arith.constant 1 : index
    %21 = memref.load %arg2[%c1_31] : memref<10xf32, #tpu.memory_space<smem>>
    %c2_32 = arith.constant 2 : index
    %22 = memref.load %arg2[%c2_32] : memref<10xf32, #tpu.memory_space<smem>>
    %c3_33 = arith.constant 3 : index
    %23 = memref.load %arg2[%c3_33] : memref<10xf32, #tpu.memory_space<smem>>
    %c4_34 = arith.constant 4 : index
    %24 = memref.load %arg2[%c4_34] : memref<10xf32, #tpu.memory_space<smem>>
    %c5_35 = arith.constant 5 : index
    %25 = memref.load %arg2[%c5_35] : memref<10xf32, #tpu.memory_space<smem>>
    %c6_36 = arith.constant 6 : index
    %26 = memref.load %arg2[%c6_36] : memref<10xf32, #tpu.memory_space<smem>>
    %c7_37 = arith.constant 7 : index
    %27 = memref.load %arg2[%c7_37] : memref<10xf32, #tpu.memory_space<smem>>
    %c8_38 = arith.constant 8 : index
    %28 = memref.load %arg2[%c8_38] : memref<10xf32, #tpu.memory_space<smem>>
    %c9_39 = arith.constant 9 : index
    %29 = memref.load %arg2[%c9_39] : memref<10xf32, #tpu.memory_space<smem>>
    %c0_40 = arith.constant 0 : index
    %c0_41 = arith.constant 0 : index
    %30 = memref.load %arg3[%c0_40, %c0_41] : memref<10x10xf32, #tpu.memory_space<smem>>
    %c0_42 = arith.constant 0 : index
    %c1_43 = arith.constant 1 : index
    %31 = memref.load %arg3[%c0_42, %c1_43] : memref<10x10xf32, #tpu.memory_space<smem>>
    %c0_44 = arith.constant 0 : index
    %c2_45 = arith.constant 2 : index
    %32 = memref.load %arg3[%c0_44, %c2_45] : memref<10x10xf32, #tpu.memory_space<smem>>
    %c0_46 = arith.constant 0 : index
    %c3_47 = arith.constant 3 : index
    %33 = memref.load %arg3[%c0_46, %c3_47] : memref<10x10xf32, #tpu.memory_space<smem>>
    %c0_48 = arith.constant 0 : index
    %c4_49 = arith.constant 4 : index
    %34 = memref.load %arg3[%c0_48, %c4_49] : memref<10x10xf32, #tpu.memory_space<smem>>
    %c0_50 = arith.constant 0 : index
    %c5_51 = arith.constant 5 : index
    %35 = memref.load %arg3[%c0_50, %c5_51] : memref<10x10xf32, #tpu.memory_space<smem>>
    %c0_52 = arith.constant 0 : index
    %c6_53 = arith.constant 6 : index
    %36 = memref.load %arg3[%c0_52, %c6_53] : memref<10x10xf32, #tpu.memory_space<smem>>
    %c0_54 = arith.constant 0 : index
    %c7_55 = arith.constant 7 : index
    %37 = memref.load %arg3[%c0_54, %c7_55] : memref<10x10xf32, #tpu.memory_space<smem>>
    %c0_56 = arith.constant 0 : index
    %c8_57 = arith.constant 8 : index
    %38 = memref.load %arg3[%c0_56, %c8_57] : memref<10x10xf32, #tpu.memory_space<smem>>
    %c0_58 = arith.constant 0 : index
    %c9_59 = arith.constant 9 : index
    %39 = memref.load %arg3[%c0_58, %c9_59] : memref<10x10xf32, #tpu.memory_space<smem>>
    %c1_60 = arith.constant 1 : index
    %c0_61 = arith.constant 0 : index
    %40 = memref.load %arg3[%c1_60, %c0_61] : memref<10x10xf32, #tpu.memory_space<smem>>
    %c1_62 = arith.constant 1 : index
    %c1_63 = arith.constant 1 : index
    %41 = memref.load %arg3[%c1_62, %c1_63] : memref<10x10xf32, #tpu.memory_space<smem>>
    %c1_64 = arith.constant 1 : index
    %c2_65 = arith.constant 2 : index
    %42 = memref.load %arg3[%c1_64, %c2_65] : memref<10x10xf32, #tpu.memory_space<smem>>
    %c1_66 = arith.constant 1 : index
    %c3_67 = arith.constant 3 : index
    %43 = memref.load %arg3[%c1_66, %c3_67] : memref<10x10xf32, #tpu.memory_space<smem>>
    %c1_68 = arith.constant 1 : index
    %c4_69 = arith.constant 4 : index
    %44 = memref.load %arg3[%c1_68, %c4_69] : memref<10x10xf32, #tpu.memory_space<smem>>
    %c1_70 = arith.constant 1 : index
    %c5_71 = arith.constant 5 : index
    %45 = memref.load %arg3[%c1_70, %c5_71] : memref<10x10xf32, #tpu.memory_space<smem>>
    %c1_72 = arith.constant 1 : index
    %c6_73 = arith.constant 6 : index
    %46 = memref.load %arg3[%c1_72, %c6_73] : memref<10x10xf32, #tpu.memory_space<smem>>
    %c1_74 = arith.constant 1 : index
    %c7_75 = arith.constant 7 : index
    %47 = memref.load %arg3[%c1_74, %c7_75] : memref<10x10xf32, #tpu.memory_space<smem>>
    %c1_76 = arith.constant 1 : index
    %c8_77 = arith.constant 8 : index
    %48 = memref.load %arg3[%c1_76, %c8_77] : memref<10x10xf32, #tpu.memory_space<smem>>
    %c1_78 = arith.constant 1 : index
    %c9_79 = arith.constant 9 : index
    %49 = memref.load %arg3[%c1_78, %c9_79] : memref<10x10xf32, #tpu.memory_space<smem>>
    %c2_80 = arith.constant 2 : index
    %c0_81 = arith.constant 0 : index
    %50 = memref.load %arg3[%c2_80, %c0_81] : memref<10x10xf32, #tpu.memory_space<smem>>
    %c2_82 = arith.constant 2 : index
    %c1_83 = arith.constant 1 : index
    %51 = memref.load %arg3[%c2_82, %c1_83] : memref<10x10xf32, #tpu.memory_space<smem>>
    %c2_84 = arith.constant 2 : index
    %c2_85 = arith.constant 2 : index
    %52 = memref.load %arg3[%c2_84, %c2_85] : memref<10x10xf32, #tpu.memory_space<smem>>
    %c2_86 = arith.constant 2 : index
    %c3_87 = arith.constant 3 : index
    %53 = memref.load %arg3[%c2_86, %c3_87] : memref<10x10xf32, #tpu.memory_space<smem>>
    %c2_88 = arith.constant 2 : index
    %c4_89 = arith.constant 4 : index
    %54 = memref.load %arg3[%c2_88, %c4_89] : memref<10x10xf32, #tpu.memory_space<smem>>
    %c2_90 = arith.constant 2 : index
    %c5_91 = arith.constant 5 : index
    %55 = memref.load %arg3[%c2_90, %c5_91] : memref<10x10xf32, #tpu.memory_space<smem>>
    %c2_92 = arith.constant 2 : index
    %c6_93 = arith.constant 6 : index
    %56 = memref.load %arg3[%c2_92, %c6_93] : memref<10x10xf32, #tpu.memory_space<smem>>
    %c2_94 = arith.constant 2 : index
    %c7_95 = arith.constant 7 : index
    %57 = memref.load %arg3[%c2_94, %c7_95] : memref<10x10xf32, #tpu.memory_space<smem>>
    %c2_96 = arith.constant 2 : index
    %c8_97 = arith.constant 8 : index
    %58 = memref.load %arg3[%c2_96, %c8_97] : memref<10x10xf32, #tpu.memory_space<smem>>
    %c2_98 = arith.constant 2 : index
    %c9_99 = arith.constant 9 : index
    %59 = memref.load %arg3[%c2_98, %c9_99] : memref<10x10xf32, #tpu.memory_space<smem>>
    %c3_100 = arith.constant 3 : index
    %c0_101 = arith.constant 0 : index
    %60 = memref.load %arg3[%c3_100, %c0_101] : memref<10x10xf32, #tpu.memory_space<smem>>
    %c3_102 = arith.constant 3 : index
    %c1_103 = arith.constant 1 : index
    %61 = memref.load %arg3[%c3_102, %c1_103] : memref<10x10xf32, #tpu.memory_space<smem>>
    %c3_104 = arith.constant 3 : index
    %c2_105 = arith.constant 2 : index
    %62 = memref.load %arg3[%c3_104, %c2_105] : memref<10x10xf32, #tpu.memory_space<smem>>
    %c3_106 = arith.constant 3 : index
    %c3_107 = arith.constant 3 : index
    %63 = memref.load %arg3[%c3_106, %c3_107] : memref<10x10xf32, #tpu.memory_space<smem>>
    %c3_108 = arith.constant 3 : index
    %c4_109 = arith.constant 4 : index
    %64 = memref.load %arg3[%c3_108, %c4_109] : memref<10x10xf32, #tpu.memory_space<smem>>
    %c3_110 = arith.constant 3 : index
    %c5_111 = arith.constant 5 : index
    %65 = memref.load %arg3[%c3_110, %c5_111] : memref<10x10xf32, #tpu.memory_space<smem>>
    %c3_112 = arith.constant 3 : index
    %c6_113 = arith.constant 6 : index
    %66 = memref.load %arg3[%c3_112, %c6_113] : memref<10x10xf32, #tpu.memory_space<smem>>
    %c3_114 = arith.constant 3 : index
    %c7_115 = arith.constant 7 : index
    %67 = memref.load %arg3[%c3_114, %c7_115] : memref<10x10xf32, #tpu.memory_space<smem>>
    %c3_116 = arith.constant 3 : index
    %c8_117 = arith.constant 8 : index
    %68 = memref.load %arg3[%c3_116, %c8_117] : memref<10x10xf32, #tpu.memory_space<smem>>
    %c3_118 = arith.constant 3 : index
    %c9_119 = arith.constant 9 : index
    %69 = memref.load %arg3[%c3_118, %c9_119] : memref<10x10xf32, #tpu.memory_space<smem>>
    %c4_120 = arith.constant 4 : index
    %c0_121 = arith.constant 0 : index
    %70 = memref.load %arg3[%c4_120, %c0_121] : memref<10x10xf32, #tpu.memory_space<smem>>
    %c4_122 = arith.constant 4 : index
    %c1_123 = arith.constant 1 : index
    %71 = memref.load %arg3[%c4_122, %c1_123] : memref<10x10xf32, #tpu.memory_space<smem>>
    %c4_124 = arith.constant 4 : index
    %c2_125 = arith.constant 2 : index
    %72 = memref.load %arg3[%c4_124, %c2_125] : memref<10x10xf32, #tpu.memory_space<smem>>
    %c4_126 = arith.constant 4 : index
    %c3_127 = arith.constant 3 : index
    %73 = memref.load %arg3[%c4_126, %c3_127] : memref<10x10xf32, #tpu.memory_space<smem>>
    %c4_128 = arith.constant 4 : index
    %c4_129 = arith.constant 4 : index
    %74 = memref.load %arg3[%c4_128, %c4_129] : memref<10x10xf32, #tpu.memory_space<smem>>
    %c4_130 = arith.constant 4 : index
    %c5_131 = arith.constant 5 : index
    %75 = memref.load %arg3[%c4_130, %c5_131] : memref<10x10xf32, #tpu.memory_space<smem>>
    %c4_132 = arith.constant 4 : index
    %c6_133 = arith.constant 6 : index
    %76 = memref.load %arg3[%c4_132, %c6_133] : memref<10x10xf32, #tpu.memory_space<smem>>
    %c4_134 = arith.constant 4 : index
    %c7_135 = arith.constant 7 : index
    %77 = memref.load %arg3[%c4_134, %c7_135] : memref<10x10xf32, #tpu.memory_space<smem>>
    %c4_136 = arith.constant 4 : index
    %c8_137 = arith.constant 8 : index
    %78 = memref.load %arg3[%c4_136, %c8_137] : memref<10x10xf32, #tpu.memory_space<smem>>
    %c4_138 = arith.constant 4 : index
    %c9_139 = arith.constant 9 : index
    %79 = memref.load %arg3[%c4_138, %c9_139] : memref<10x10xf32, #tpu.memory_space<smem>>
    %c5_140 = arith.constant 5 : index
    %c0_141 = arith.constant 0 : index
    %80 = memref.load %arg3[%c5_140, %c0_141] : memref<10x10xf32, #tpu.memory_space<smem>>
    %c5_142 = arith.constant 5 : index
    %c1_143 = arith.constant 1 : index
    %81 = memref.load %arg3[%c5_142, %c1_143] : memref<10x10xf32, #tpu.memory_space<smem>>
    %c5_144 = arith.constant 5 : index
    %c2_145 = arith.constant 2 : index
    %82 = memref.load %arg3[%c5_144, %c2_145] : memref<10x10xf32, #tpu.memory_space<smem>>
    %c5_146 = arith.constant 5 : index
    %c3_147 = arith.constant 3 : index
    %83 = memref.load %arg3[%c5_146, %c3_147] : memref<10x10xf32, #tpu.memory_space<smem>>
    %c5_148 = arith.constant 5 : index
    %c4_149 = arith.constant 4 : index
    %84 = memref.load %arg3[%c5_148, %c4_149] : memref<10x10xf32, #tpu.memory_space<smem>>
    %c5_150 = arith.constant 5 : index
    %c5_151 = arith.constant 5 : index
    %85 = memref.load %arg3[%c5_150, %c5_151] : memref<10x10xf32, #tpu.memory_space<smem>>
    %c5_152 = arith.constant 5 : index
    %c6_153 = arith.constant 6 : index
    %86 = memref.load %arg3[%c5_152, %c6_153] : memref<10x10xf32, #tpu.memory_space<smem>>
    %c5_154 = arith.constant 5 : index
    %c7_155 = arith.constant 7 : index
    %87 = memref.load %arg3[%c5_154, %c7_155] : memref<10x10xf32, #tpu.memory_space<smem>>
    %c5_156 = arith.constant 5 : index
    %c8_157 = arith.constant 8 : index
    %88 = memref.load %arg3[%c5_156, %c8_157] : memref<10x10xf32, #tpu.memory_space<smem>>
    %c5_158 = arith.constant 5 : index
    %c9_159 = arith.constant 9 : index
    %89 = memref.load %arg3[%c5_158, %c9_159] : memref<10x10xf32, #tpu.memory_space<smem>>
    %c6_160 = arith.constant 6 : index
    %c0_161 = arith.constant 0 : index
    %90 = memref.load %arg3[%c6_160, %c0_161] : memref<10x10xf32, #tpu.memory_space<smem>>
    %c6_162 = arith.constant 6 : index
    %c1_163 = arith.constant 1 : index
    %91 = memref.load %arg3[%c6_162, %c1_163] : memref<10x10xf32, #tpu.memory_space<smem>>
    %c6_164 = arith.constant 6 : index
    %c2_165 = arith.constant 2 : index
    %92 = memref.load %arg3[%c6_164, %c2_165] : memref<10x10xf32, #tpu.memory_space<smem>>
    %c6_166 = arith.constant 6 : index
    %c3_167 = arith.constant 3 : index
    %93 = memref.load %arg3[%c6_166, %c3_167] : memref<10x10xf32, #tpu.memory_space<smem>>
    %c6_168 = arith.constant 6 : index
    %c4_169 = arith.constant 4 : index
    %94 = memref.load %arg3[%c6_168, %c4_169] : memref<10x10xf32, #tpu.memory_space<smem>>
    %c6_170 = arith.constant 6 : index
    %c5_171 = arith.constant 5 : index
    %95 = memref.load %arg3[%c6_170, %c5_171] : memref<10x10xf32, #tpu.memory_space<smem>>
    %c6_172 = arith.constant 6 : index
    %c6_173 = arith.constant 6 : index
    %96 = memref.load %arg3[%c6_172, %c6_173] : memref<10x10xf32, #tpu.memory_space<smem>>
    %c6_174 = arith.constant 6 : index
    %c7_175 = arith.constant 7 : index
    %97 = memref.load %arg3[%c6_174, %c7_175] : memref<10x10xf32, #tpu.memory_space<smem>>
    %c6_176 = arith.constant 6 : index
    %c8_177 = arith.constant 8 : index
    %98 = memref.load %arg3[%c6_176, %c8_177] : memref<10x10xf32, #tpu.memory_space<smem>>
    %c6_178 = arith.constant 6 : index
    %c9_179 = arith.constant 9 : index
    %99 = memref.load %arg3[%c6_178, %c9_179] : memref<10x10xf32, #tpu.memory_space<smem>>
    %c7_180 = arith.constant 7 : index
    %c0_181 = arith.constant 0 : index
    %100 = memref.load %arg3[%c7_180, %c0_181] : memref<10x10xf32, #tpu.memory_space<smem>>
    %c7_182 = arith.constant 7 : index
    %c1_183 = arith.constant 1 : index
    %101 = memref.load %arg3[%c7_182, %c1_183] : memref<10x10xf32, #tpu.memory_space<smem>>
    %c7_184 = arith.constant 7 : index
    %c2_185 = arith.constant 2 : index
    %102 = memref.load %arg3[%c7_184, %c2_185] : memref<10x10xf32, #tpu.memory_space<smem>>
    %c7_186 = arith.constant 7 : index
    %c3_187 = arith.constant 3 : index
    %103 = memref.load %arg3[%c7_186, %c3_187] : memref<10x10xf32, #tpu.memory_space<smem>>
    %c7_188 = arith.constant 7 : index
    %c4_189 = arith.constant 4 : index
    %104 = memref.load %arg3[%c7_188, %c4_189] : memref<10x10xf32, #tpu.memory_space<smem>>
    %c7_190 = arith.constant 7 : index
    %c5_191 = arith.constant 5 : index
    %105 = memref.load %arg3[%c7_190, %c5_191] : memref<10x10xf32, #tpu.memory_space<smem>>
    %c7_192 = arith.constant 7 : index
    %c6_193 = arith.constant 6 : index
    %106 = memref.load %arg3[%c7_192, %c6_193] : memref<10x10xf32, #tpu.memory_space<smem>>
    %c7_194 = arith.constant 7 : index
    %c7_195 = arith.constant 7 : index
    %107 = memref.load %arg3[%c7_194, %c7_195] : memref<10x10xf32, #tpu.memory_space<smem>>
    %c7_196 = arith.constant 7 : index
    %c8_197 = arith.constant 8 : index
    %108 = memref.load %arg3[%c7_196, %c8_197] : memref<10x10xf32, #tpu.memory_space<smem>>
    %c7_198 = arith.constant 7 : index
    %c9_199 = arith.constant 9 : index
    %109 = memref.load %arg3[%c7_198, %c9_199] : memref<10x10xf32, #tpu.memory_space<smem>>
    %c8_200 = arith.constant 8 : index
    %c0_201 = arith.constant 0 : index
    %110 = memref.load %arg3[%c8_200, %c0_201] : memref<10x10xf32, #tpu.memory_space<smem>>
    %c8_202 = arith.constant 8 : index
    %c1_203 = arith.constant 1 : index
    %111 = memref.load %arg3[%c8_202, %c1_203] : memref<10x10xf32, #tpu.memory_space<smem>>
    %c8_204 = arith.constant 8 : index
    %c2_205 = arith.constant 2 : index
    %112 = memref.load %arg3[%c8_204, %c2_205] : memref<10x10xf32, #tpu.memory_space<smem>>
    %c8_206 = arith.constant 8 : index
    %c3_207 = arith.constant 3 : index
    %113 = memref.load %arg3[%c8_206, %c3_207] : memref<10x10xf32, #tpu.memory_space<smem>>
    %c8_208 = arith.constant 8 : index
    %c4_209 = arith.constant 4 : index
    %114 = memref.load %arg3[%c8_208, %c4_209] : memref<10x10xf32, #tpu.memory_space<smem>>
    %c8_210 = arith.constant 8 : index
    %c5_211 = arith.constant 5 : index
    %115 = memref.load %arg3[%c8_210, %c5_211] : memref<10x10xf32, #tpu.memory_space<smem>>
    %c8_212 = arith.constant 8 : index
    %c6_213 = arith.constant 6 : index
    %116 = memref.load %arg3[%c8_212, %c6_213] : memref<10x10xf32, #tpu.memory_space<smem>>
    %c8_214 = arith.constant 8 : index
    %c7_215 = arith.constant 7 : index
    %117 = memref.load %arg3[%c8_214, %c7_215] : memref<10x10xf32, #tpu.memory_space<smem>>
    %c8_216 = arith.constant 8 : index
    %c8_217 = arith.constant 8 : index
    %118 = memref.load %arg3[%c8_216, %c8_217] : memref<10x10xf32, #tpu.memory_space<smem>>
    %c8_218 = arith.constant 8 : index
    %c9_219 = arith.constant 9 : index
    %119 = memref.load %arg3[%c8_218, %c9_219] : memref<10x10xf32, #tpu.memory_space<smem>>
    %c9_220 = arith.constant 9 : index
    %c0_221 = arith.constant 0 : index
    %120 = memref.load %arg3[%c9_220, %c0_221] : memref<10x10xf32, #tpu.memory_space<smem>>
    %c9_222 = arith.constant 9 : index
    %c1_223 = arith.constant 1 : index
    %121 = memref.load %arg3[%c9_222, %c1_223] : memref<10x10xf32, #tpu.memory_space<smem>>
    %c9_224 = arith.constant 9 : index
    %c2_225 = arith.constant 2 : index
    %122 = memref.load %arg3[%c9_224, %c2_225] : memref<10x10xf32, #tpu.memory_space<smem>>
    %c9_226 = arith.constant 9 : index
    %c3_227 = arith.constant 3 : index
    %123 = memref.load %arg3[%c9_226, %c3_227] : memref<10x10xf32, #tpu.memory_space<smem>>
    %c9_228 = arith.constant 9 : index
    %c4_229 = arith.constant 4 : index
    %124 = memref.load %arg3[%c9_228, %c4_229] : memref<10x10xf32, #tpu.memory_space<smem>>
    %c9_230 = arith.constant 9 : index
    %c5_231 = arith.constant 5 : index
    %125 = memref.load %arg3[%c9_230, %c5_231] : memref<10x10xf32, #tpu.memory_space<smem>>
    %c9_232 = arith.constant 9 : index
    %c6_233 = arith.constant 6 : index
    %126 = memref.load %arg3[%c9_232, %c6_233] : memref<10x10xf32, #tpu.memory_space<smem>>
    %c9_234 = arith.constant 9 : index
    %c7_235 = arith.constant 7 : index
    %127 = memref.load %arg3[%c9_234, %c7_235] : memref<10x10xf32, #tpu.memory_space<smem>>
    %c9_236 = arith.constant 9 : index
    %c8_237 = arith.constant 8 : index
    %128 = memref.load %arg3[%c9_236, %c8_237] : memref<10x10xf32, #tpu.memory_space<smem>>
    %c9_238 = arith.constant 9 : index
    %c9_239 = arith.constant 9 : index
    %129 = memref.load %arg3[%c9_238, %c9_239] : memref<10x10xf32, #tpu.memory_space<smem>>
    %c0_240 = arith.constant 0 : index
    %130 = memref.load %arg4[%c0_240] : memref<10xf32, #tpu.memory_space<smem>>
    %c1_241 = arith.constant 1 : index
    %131 = memref.load %arg4[%c1_241] : memref<10xf32, #tpu.memory_space<smem>>
    %c2_242 = arith.constant 2 : index
    %132 = memref.load %arg4[%c2_242] : memref<10xf32, #tpu.memory_space<smem>>
    %c3_243 = arith.constant 3 : index
    %133 = memref.load %arg4[%c3_243] : memref<10xf32, #tpu.memory_space<smem>>
    %c4_244 = arith.constant 4 : index
    %134 = memref.load %arg4[%c4_244] : memref<10xf32, #tpu.memory_space<smem>>
    %c5_245 = arith.constant 5 : index
    %135 = memref.load %arg4[%c5_245] : memref<10xf32, #tpu.memory_space<smem>>
    %c6_246 = arith.constant 6 : index
    %136 = memref.load %arg4[%c6_246] : memref<10xf32, #tpu.memory_space<smem>>
    %c7_247 = arith.constant 7 : index
    %137 = memref.load %arg4[%c7_247] : memref<10xf32, #tpu.memory_space<smem>>
    %c8_248 = arith.constant 8 : index
    %138 = memref.load %arg4[%c8_248] : memref<10xf32, #tpu.memory_space<smem>>
    %c9_249 = arith.constant 9 : index
    %139 = memref.load %arg4[%c9_249] : memref<10xf32, #tpu.memory_space<smem>>
    %c0_250 = arith.constant 0 : index
    %c0_251 = arith.constant 0 : index
    %140 = memref.load %arg5[%c0_250, %c0_251] : memref<2x10xf32, #tpu.memory_space<smem>>
    %c0_252 = arith.constant 0 : index
    %c1_253 = arith.constant 1 : index
    %141 = memref.load %arg5[%c0_252, %c1_253] : memref<2x10xf32, #tpu.memory_space<smem>>
    %c0_254 = arith.constant 0 : index
    %c2_255 = arith.constant 2 : index
    %142 = memref.load %arg5[%c0_254, %c2_255] : memref<2x10xf32, #tpu.memory_space<smem>>
    %c0_256 = arith.constant 0 : index
    %c3_257 = arith.constant 3 : index
    %143 = memref.load %arg5[%c0_256, %c3_257] : memref<2x10xf32, #tpu.memory_space<smem>>
    %c0_258 = arith.constant 0 : index
    %c4_259 = arith.constant 4 : index
    %144 = memref.load %arg5[%c0_258, %c4_259] : memref<2x10xf32, #tpu.memory_space<smem>>
    %c0_260 = arith.constant 0 : index
    %c5_261 = arith.constant 5 : index
    %145 = memref.load %arg5[%c0_260, %c5_261] : memref<2x10xf32, #tpu.memory_space<smem>>
    %c0_262 = arith.constant 0 : index
    %c6_263 = arith.constant 6 : index
    %146 = memref.load %arg5[%c0_262, %c6_263] : memref<2x10xf32, #tpu.memory_space<smem>>
    %c0_264 = arith.constant 0 : index
    %c7_265 = arith.constant 7 : index
    %147 = memref.load %arg5[%c0_264, %c7_265] : memref<2x10xf32, #tpu.memory_space<smem>>
    %c0_266 = arith.constant 0 : index
    %c8_267 = arith.constant 8 : index
    %148 = memref.load %arg5[%c0_266, %c8_267] : memref<2x10xf32, #tpu.memory_space<smem>>
    %c0_268 = arith.constant 0 : index
    %c9_269 = arith.constant 9 : index
    %149 = memref.load %arg5[%c0_268, %c9_269] : memref<2x10xf32, #tpu.memory_space<smem>>
    %c1_270 = arith.constant 1 : index
    %c0_271 = arith.constant 0 : index
    %150 = memref.load %arg5[%c1_270, %c0_271] : memref<2x10xf32, #tpu.memory_space<smem>>
    %c1_272 = arith.constant 1 : index
    %c1_273 = arith.constant 1 : index
    %151 = memref.load %arg5[%c1_272, %c1_273] : memref<2x10xf32, #tpu.memory_space<smem>>
    %c1_274 = arith.constant 1 : index
    %c2_275 = arith.constant 2 : index
    %152 = memref.load %arg5[%c1_274, %c2_275] : memref<2x10xf32, #tpu.memory_space<smem>>
    %c1_276 = arith.constant 1 : index
    %c3_277 = arith.constant 3 : index
    %153 = memref.load %arg5[%c1_276, %c3_277] : memref<2x10xf32, #tpu.memory_space<smem>>
    %c1_278 = arith.constant 1 : index
    %c4_279 = arith.constant 4 : index
    %154 = memref.load %arg5[%c1_278, %c4_279] : memref<2x10xf32, #tpu.memory_space<smem>>
    %c1_280 = arith.constant 1 : index
    %c5_281 = arith.constant 5 : index
    %155 = memref.load %arg5[%c1_280, %c5_281] : memref<2x10xf32, #tpu.memory_space<smem>>
    %c1_282 = arith.constant 1 : index
    %c6_283 = arith.constant 6 : index
    %156 = memref.load %arg5[%c1_282, %c6_283] : memref<2x10xf32, #tpu.memory_space<smem>>
    %c1_284 = arith.constant 1 : index
    %c7_285 = arith.constant 7 : index
    %157 = memref.load %arg5[%c1_284, %c7_285] : memref<2x10xf32, #tpu.memory_space<smem>>
    %c1_286 = arith.constant 1 : index
    %c8_287 = arith.constant 8 : index
    %158 = memref.load %arg5[%c1_286, %c8_287] : memref<2x10xf32, #tpu.memory_space<smem>>
    %c1_288 = arith.constant 1 : index
    %c9_289 = arith.constant 9 : index
    %159 = memref.load %arg5[%c1_288, %c9_289] : memref<2x10xf32, #tpu.memory_space<smem>>
    %c0_290 = arith.constant 0 : index
    %160 = memref.load %arg6[%c0_290] : memref<2xf32, #tpu.memory_space<smem>>
    %c1_291 = arith.constant 1 : index
    %161 = memref.load %arg6[%c1_291] : memref<2xf32, #tpu.memory_space<smem>>
    %c0_292 = arith.constant 0 : index
    %c0_293 = arith.constant 0 : index
    %c0_294 = arith.constant 0 : index
    %162 = vector.load %arg7[%c0_292, %c0_293, %c0_294] : memref<2x8x128xf32, #tpu.memory_space<vmem>>, vector<1x8x128xf32>
    %163 = vector.shape_cast %162 : vector<1x8x128xf32> to vector<8x128xf32>
    %c1_295 = arith.constant 1 : index
    %c0_296 = arith.constant 0 : index
    %c0_297 = arith.constant 0 : index
    %164 = vector.load %arg7[%c1_295, %c0_296, %c0_297] : memref<2x8x128xf32, #tpu.memory_space<vmem>>, vector<1x8x128xf32>
    %165 = vector.shape_cast %164 : vector<1x8x128xf32> to vector<8x128xf32>
    %166 = vector.broadcast %0 : f32 to vector<8x128xf32>
    %167 = arith.mulf %163, %166 : vector<8x128xf32>
    %168 = vector.broadcast %1 : f32 to vector<8x128xf32>
    %169 = arith.mulf %165, %168 : vector<8x128xf32>
    %170 = arith.addf %167, %169 : vector<8x128xf32>
    %171 = vector.broadcast %20 : f32 to vector<8x128xf32>
    %172 = arith.addf %170, %171 : vector<8x128xf32>
    %cst = arith.constant 0.000000e+00 : f32
    %173 = vector.broadcast %cst : f32 to vector<8x128xf32>
    %174 = arith.maximumf %172, %173 : vector<8x128xf32>
    %175 = vector.broadcast %2 : f32 to vector<8x128xf32>
    %176 = arith.mulf %163, %175 : vector<8x128xf32>
    %177 = vector.broadcast %3 : f32 to vector<8x128xf32>
    %178 = arith.mulf %165, %177 : vector<8x128xf32>
    %179 = arith.addf %176, %178 : vector<8x128xf32>
    %180 = vector.broadcast %21 : f32 to vector<8x128xf32>
    %181 = arith.addf %179, %180 : vector<8x128xf32>
    %cst_298 = arith.constant 0.000000e+00 : f32
    %182 = vector.broadcast %cst_298 : f32 to vector<8x128xf32>
    %183 = arith.maximumf %181, %182 : vector<8x128xf32>
    %184 = vector.broadcast %4 : f32 to vector<8x128xf32>
    %185 = arith.mulf %163, %184 : vector<8x128xf32>
    %186 = vector.broadcast %5 : f32 to vector<8x128xf32>
    %187 = arith.mulf %165, %186 : vector<8x128xf32>
    %188 = arith.addf %185, %187 : vector<8x128xf32>
    %189 = vector.broadcast %22 : f32 to vector<8x128xf32>
    %190 = arith.addf %188, %189 : vector<8x128xf32>
    %cst_299 = arith.constant 0.000000e+00 : f32
    %191 = vector.broadcast %cst_299 : f32 to vector<8x128xf32>
    %192 = arith.maximumf %190, %191 : vector<8x128xf32>
    %193 = vector.broadcast %6 : f32 to vector<8x128xf32>
    %194 = arith.mulf %163, %193 : vector<8x128xf32>
    %195 = vector.broadcast %7 : f32 to vector<8x128xf32>
    %196 = arith.mulf %165, %195 : vector<8x128xf32>
    %197 = arith.addf %194, %196 : vector<8x128xf32>
    %198 = vector.broadcast %23 : f32 to vector<8x128xf32>
    %199 = arith.addf %197, %198 : vector<8x128xf32>
    %cst_300 = arith.constant 0.000000e+00 : f32
    %200 = vector.broadcast %cst_300 : f32 to vector<8x128xf32>
    %201 = arith.maximumf %199, %200 : vector<8x128xf32>
    %202 = vector.broadcast %8 : f32 to vector<8x128xf32>
    %203 = arith.mulf %163, %202 : vector<8x128xf32>
    %204 = vector.broadcast %9 : f32 to vector<8x128xf32>
    %205 = arith.mulf %165, %204 : vector<8x128xf32>
    %206 = arith.addf %203, %205 : vector<8x128xf32>
    %207 = vector.broadcast %24 : f32 to vector<8x128xf32>
    %208 = arith.addf %206, %207 : vector<8x128xf32>
    %cst_301 = arith.constant 0.000000e+00 : f32
    %209 = vector.broadcast %cst_301 : f32 to vector<8x128xf32>
    %210 = arith.maximumf %208, %209 : vector<8x128xf32>
    %211 = vector.broadcast %10 : f32 to vector<8x128xf32>
    %212 = arith.mulf %163, %211 : vector<8x128xf32>
    %213 = vector.broadcast %11 : f32 to vector<8x128xf32>
    %214 = arith.mulf %165, %213 : vector<8x128xf32>
    %215 = arith.addf %212, %214 : vector<8x128xf32>
    %216 = vector.broadcast %25 : f32 to vector<8x128xf32>
    %217 = arith.addf %215, %216 : vector<8x128xf32>
    %cst_302 = arith.constant 0.000000e+00 : f32
    %218 = vector.broadcast %cst_302 : f32 to vector<8x128xf32>
    %219 = arith.maximumf %217, %218 : vector<8x128xf32>
    %220 = vector.broadcast %12 : f32 to vector<8x128xf32>
    %221 = arith.mulf %163, %220 : vector<8x128xf32>
    %222 = vector.broadcast %13 : f32 to vector<8x128xf32>
    %223 = arith.mulf %165, %222 : vector<8x128xf32>
    %224 = arith.addf %221, %223 : vector<8x128xf32>
    %225 = vector.broadcast %26 : f32 to vector<8x128xf32>
    %226 = arith.addf %224, %225 : vector<8x128xf32>
    %cst_303 = arith.constant 0.000000e+00 : f32
    %227 = vector.broadcast %cst_303 : f32 to vector<8x128xf32>
    %228 = arith.maximumf %226, %227 : vector<8x128xf32>
    %229 = vector.broadcast %14 : f32 to vector<8x128xf32>
    %230 = arith.mulf %163, %229 : vector<8x128xf32>
    %231 = vector.broadcast %15 : f32 to vector<8x128xf32>
    %232 = arith.mulf %165, %231 : vector<8x128xf32>
    %233 = arith.addf %230, %232 : vector<8x128xf32>
    %234 = vector.broadcast %27 : f32 to vector<8x128xf32>
    %235 = arith.addf %233, %234 : vector<8x128xf32>
    %cst_304 = arith.constant 0.000000e+00 : f32
    %236 = vector.broadcast %cst_304 : f32 to vector<8x128xf32>
    %237 = arith.maximumf %235, %236 : vector<8x128xf32>
    %238 = vector.broadcast %16 : f32 to vector<8x128xf32>
    %239 = arith.mulf %163, %238 : vector<8x128xf32>
    %240 = vector.broadcast %17 : f32 to vector<8x128xf32>
    %241 = arith.mulf %165, %240 : vector<8x128xf32>
    %242 = arith.addf %239, %241 : vector<8x128xf32>
    %243 = vector.broadcast %28 : f32 to vector<8x128xf32>
    %244 = arith.addf %242, %243 : vector<8x128xf32>
    %cst_305 = arith.constant 0.000000e+00 : f32
    %245 = vector.broadcast %cst_305 : f32 to vector<8x128xf32>
    %246 = arith.maximumf %244, %245 : vector<8x128xf32>
    %247 = vector.broadcast %18 : f32 to vector<8x128xf32>
    %248 = arith.mulf %163, %247 : vector<8x128xf32>
    %249 = vector.broadcast %19 : f32 to vector<8x128xf32>
    %250 = arith.mulf %165, %249 : vector<8x128xf32>
    %251 = arith.addf %248, %250 : vector<8x128xf32>
    %252 = vector.broadcast %29 : f32 to vector<8x128xf32>
    %253 = arith.addf %251, %252 : vector<8x128xf32>
    %cst_306 = arith.constant 0.000000e+00 : f32
    %254 = vector.broadcast %cst_306 : f32 to vector<8x128xf32>
    %255 = arith.maximumf %253, %254 : vector<8x128xf32>
    %256 = vector.broadcast %30 : f32 to vector<8x128xf32>
    %257 = arith.mulf %174, %256 : vector<8x128xf32>
    %258 = vector.broadcast %31 : f32 to vector<8x128xf32>
    %259 = arith.mulf %183, %258 : vector<8x128xf32>
    %260 = arith.addf %257, %259 : vector<8x128xf32>
    %261 = vector.broadcast %32 : f32 to vector<8x128xf32>
    %262 = arith.mulf %192, %261 : vector<8x128xf32>
    %263 = arith.addf %260, %262 : vector<8x128xf32>
    %264 = vector.broadcast %33 : f32 to vector<8x128xf32>
    %265 = arith.mulf %201, %264 : vector<8x128xf32>
    %266 = arith.addf %263, %265 : vector<8x128xf32>
    %267 = vector.broadcast %34 : f32 to vector<8x128xf32>
    %268 = arith.mulf %210, %267 : vector<8x128xf32>
    %269 = arith.addf %266, %268 : vector<8x128xf32>
    %270 = vector.broadcast %35 : f32 to vector<8x128xf32>
    %271 = arith.mulf %219, %270 : vector<8x128xf32>
    %272 = arith.addf %269, %271 : vector<8x128xf32>
    %273 = vector.broadcast %36 : f32 to vector<8x128xf32>
    %274 = arith.mulf %228, %273 : vector<8x128xf32>
    %275 = arith.addf %272, %274 : vector<8x128xf32>
    %276 = vector.broadcast %37 : f32 to vector<8x128xf32>
    %277 = arith.mulf %237, %276 : vector<8x128xf32>
    %278 = arith.addf %275, %277 : vector<8x128xf32>
    %279 = vector.broadcast %38 : f32 to vector<8x128xf32>
    %280 = arith.mulf %246, %279 : vector<8x128xf32>
    %281 = arith.addf %278, %280 : vector<8x128xf32>
    %282 = vector.broadcast %39 : f32 to vector<8x128xf32>
    %283 = arith.mulf %255, %282 : vector<8x128xf32>
    %284 = arith.addf %281, %283 : vector<8x128xf32>
    %285 = vector.broadcast %130 : f32 to vector<8x128xf32>
    %286 = arith.addf %284, %285 : vector<8x128xf32>
    %cst_307 = arith.constant 0.000000e+00 : f32
    %287 = vector.broadcast %cst_307 : f32 to vector<8x128xf32>
    %288 = arith.maximumf %286, %287 : vector<8x128xf32>
    %289 = vector.broadcast %40 : f32 to vector<8x128xf32>
    %290 = arith.mulf %174, %289 : vector<8x128xf32>
    %291 = vector.broadcast %41 : f32 to vector<8x128xf32>
    %292 = arith.mulf %183, %291 : vector<8x128xf32>
    %293 = arith.addf %290, %292 : vector<8x128xf32>
    %294 = vector.broadcast %42 : f32 to vector<8x128xf32>
    %295 = arith.mulf %192, %294 : vector<8x128xf32>
    %296 = arith.addf %293, %295 : vector<8x128xf32>
    %297 = vector.broadcast %43 : f32 to vector<8x128xf32>
    %298 = arith.mulf %201, %297 : vector<8x128xf32>
    %299 = arith.addf %296, %298 : vector<8x128xf32>
    %300 = vector.broadcast %44 : f32 to vector<8x128xf32>
    %301 = arith.mulf %210, %300 : vector<8x128xf32>
    %302 = arith.addf %299, %301 : vector<8x128xf32>
    %303 = vector.broadcast %45 : f32 to vector<8x128xf32>
    %304 = arith.mulf %219, %303 : vector<8x128xf32>
    %305 = arith.addf %302, %304 : vector<8x128xf32>
    %306 = vector.broadcast %46 : f32 to vector<8x128xf32>
    %307 = arith.mulf %228, %306 : vector<8x128xf32>
    %308 = arith.addf %305, %307 : vector<8x128xf32>
    %309 = vector.broadcast %47 : f32 to vector<8x128xf32>
    %310 = arith.mulf %237, %309 : vector<8x128xf32>
    %311 = arith.addf %308, %310 : vector<8x128xf32>
    %312 = vector.broadcast %48 : f32 to vector<8x128xf32>
    %313 = arith.mulf %246, %312 : vector<8x128xf32>
    %314 = arith.addf %311, %313 : vector<8x128xf32>
    %315 = vector.broadcast %49 : f32 to vector<8x128xf32>
    %316 = arith.mulf %255, %315 : vector<8x128xf32>
    %317 = arith.addf %314, %316 : vector<8x128xf32>
    %318 = vector.broadcast %131 : f32 to vector<8x128xf32>
    %319 = arith.addf %317, %318 : vector<8x128xf32>
    %cst_308 = arith.constant 0.000000e+00 : f32
    %320 = vector.broadcast %cst_308 : f32 to vector<8x128xf32>
    %321 = arith.maximumf %319, %320 : vector<8x128xf32>
    %322 = vector.broadcast %50 : f32 to vector<8x128xf32>
    %323 = arith.mulf %174, %322 : vector<8x128xf32>
    %324 = vector.broadcast %51 : f32 to vector<8x128xf32>
    %325 = arith.mulf %183, %324 : vector<8x128xf32>
    %326 = arith.addf %323, %325 : vector<8x128xf32>
    %327 = vector.broadcast %52 : f32 to vector<8x128xf32>
    %328 = arith.mulf %192, %327 : vector<8x128xf32>
    %329 = arith.addf %326, %328 : vector<8x128xf32>
    %330 = vector.broadcast %53 : f32 to vector<8x128xf32>
    %331 = arith.mulf %201, %330 : vector<8x128xf32>
    %332 = arith.addf %329, %331 : vector<8x128xf32>
    %333 = vector.broadcast %54 : f32 to vector<8x128xf32>
    %334 = arith.mulf %210, %333 : vector<8x128xf32>
    %335 = arith.addf %332, %334 : vector<8x128xf32>
    %336 = vector.broadcast %55 : f32 to vector<8x128xf32>
    %337 = arith.mulf %219, %336 : vector<8x128xf32>
    %338 = arith.addf %335, %337 : vector<8x128xf32>
    %339 = vector.broadcast %56 : f32 to vector<8x128xf32>
    %340 = arith.mulf %228, %339 : vector<8x128xf32>
    %341 = arith.addf %338, %340 : vector<8x128xf32>
    %342 = vector.broadcast %57 : f32 to vector<8x128xf32>
    %343 = arith.mulf %237, %342 : vector<8x128xf32>
    %344 = arith.addf %341, %343 : vector<8x128xf32>
    %345 = vector.broadcast %58 : f32 to vector<8x128xf32>
    %346 = arith.mulf %246, %345 : vector<8x128xf32>
    %347 = arith.addf %344, %346 : vector<8x128xf32>
    %348 = vector.broadcast %59 : f32 to vector<8x128xf32>
    %349 = arith.mulf %255, %348 : vector<8x128xf32>
    %350 = arith.addf %347, %349 : vector<8x128xf32>
    %351 = vector.broadcast %132 : f32 to vector<8x128xf32>
    %352 = arith.addf %350, %351 : vector<8x128xf32>
    %cst_309 = arith.constant 0.000000e+00 : f32
    %353 = vector.broadcast %cst_309 : f32 to vector<8x128xf32>
    %354 = arith.maximumf %352, %353 : vector<8x128xf32>
    %355 = vector.broadcast %60 : f32 to vector<8x128xf32>
    %356 = arith.mulf %174, %355 : vector<8x128xf32>
    %357 = vector.broadcast %61 : f32 to vector<8x128xf32>
    %358 = arith.mulf %183, %357 : vector<8x128xf32>
    %359 = arith.addf %356, %358 : vector<8x128xf32>
    %360 = vector.broadcast %62 : f32 to vector<8x128xf32>
    %361 = arith.mulf %192, %360 : vector<8x128xf32>
    %362 = arith.addf %359, %361 : vector<8x128xf32>
    %363 = vector.broadcast %63 : f32 to vector<8x128xf32>
    %364 = arith.mulf %201, %363 : vector<8x128xf32>
    %365 = arith.addf %362, %364 : vector<8x128xf32>
    %366 = vector.broadcast %64 : f32 to vector<8x128xf32>
    %367 = arith.mulf %210, %366 : vector<8x128xf32>
    %368 = arith.addf %365, %367 : vector<8x128xf32>
    %369 = vector.broadcast %65 : f32 to vector<8x128xf32>
    %370 = arith.mulf %219, %369 : vector<8x128xf32>
    %371 = arith.addf %368, %370 : vector<8x128xf32>
    %372 = vector.broadcast %66 : f32 to vector<8x128xf32>
    %373 = arith.mulf %228, %372 : vector<8x128xf32>
    %374 = arith.addf %371, %373 : vector<8x128xf32>
    %375 = vector.broadcast %67 : f32 to vector<8x128xf32>
    %376 = arith.mulf %237, %375 : vector<8x128xf32>
    %377 = arith.addf %374, %376 : vector<8x128xf32>
    %378 = vector.broadcast %68 : f32 to vector<8x128xf32>
    %379 = arith.mulf %246, %378 : vector<8x128xf32>
    %380 = arith.addf %377, %379 : vector<8x128xf32>
    %381 = vector.broadcast %69 : f32 to vector<8x128xf32>
    %382 = arith.mulf %255, %381 : vector<8x128xf32>
    %383 = arith.addf %380, %382 : vector<8x128xf32>
    %384 = vector.broadcast %133 : f32 to vector<8x128xf32>
    %385 = arith.addf %383, %384 : vector<8x128xf32>
    %cst_310 = arith.constant 0.000000e+00 : f32
    %386 = vector.broadcast %cst_310 : f32 to vector<8x128xf32>
    %387 = arith.maximumf %385, %386 : vector<8x128xf32>
    %388 = vector.broadcast %70 : f32 to vector<8x128xf32>
    %389 = arith.mulf %174, %388 : vector<8x128xf32>
    %390 = vector.broadcast %71 : f32 to vector<8x128xf32>
    %391 = arith.mulf %183, %390 : vector<8x128xf32>
    %392 = arith.addf %389, %391 : vector<8x128xf32>
    %393 = vector.broadcast %72 : f32 to vector<8x128xf32>
    %394 = arith.mulf %192, %393 : vector<8x128xf32>
    %395 = arith.addf %392, %394 : vector<8x128xf32>
    %396 = vector.broadcast %73 : f32 to vector<8x128xf32>
    %397 = arith.mulf %201, %396 : vector<8x128xf32>
    %398 = arith.addf %395, %397 : vector<8x128xf32>
    %399 = vector.broadcast %74 : f32 to vector<8x128xf32>
    %400 = arith.mulf %210, %399 : vector<8x128xf32>
    %401 = arith.addf %398, %400 : vector<8x128xf32>
    %402 = vector.broadcast %75 : f32 to vector<8x128xf32>
    %403 = arith.mulf %219, %402 : vector<8x128xf32>
    %404 = arith.addf %401, %403 : vector<8x128xf32>
    %405 = vector.broadcast %76 : f32 to vector<8x128xf32>
    %406 = arith.mulf %228, %405 : vector<8x128xf32>
    %407 = arith.addf %404, %406 : vector<8x128xf32>
    %408 = vector.broadcast %77 : f32 to vector<8x128xf32>
    %409 = arith.mulf %237, %408 : vector<8x128xf32>
    %410 = arith.addf %407, %409 : vector<8x128xf32>
    %411 = vector.broadcast %78 : f32 to vector<8x128xf32>
    %412 = arith.mulf %246, %411 : vector<8x128xf32>
    %413 = arith.addf %410, %412 : vector<8x128xf32>
    %414 = vector.broadcast %79 : f32 to vector<8x128xf32>
    %415 = arith.mulf %255, %414 : vector<8x128xf32>
    %416 = arith.addf %413, %415 : vector<8x128xf32>
    %417 = vector.broadcast %134 : f32 to vector<8x128xf32>
    %418 = arith.addf %416, %417 : vector<8x128xf32>
    %cst_311 = arith.constant 0.000000e+00 : f32
    %419 = vector.broadcast %cst_311 : f32 to vector<8x128xf32>
    %420 = arith.maximumf %418, %419 : vector<8x128xf32>
    %421 = vector.broadcast %80 : f32 to vector<8x128xf32>
    %422 = arith.mulf %174, %421 : vector<8x128xf32>
    %423 = vector.broadcast %81 : f32 to vector<8x128xf32>
    %424 = arith.mulf %183, %423 : vector<8x128xf32>
    %425 = arith.addf %422, %424 : vector<8x128xf32>
    %426 = vector.broadcast %82 : f32 to vector<8x128xf32>
    %427 = arith.mulf %192, %426 : vector<8x128xf32>
    %428 = arith.addf %425, %427 : vector<8x128xf32>
    %429 = vector.broadcast %83 : f32 to vector<8x128xf32>
    %430 = arith.mulf %201, %429 : vector<8x128xf32>
    %431 = arith.addf %428, %430 : vector<8x128xf32>
    %432 = vector.broadcast %84 : f32 to vector<8x128xf32>
    %433 = arith.mulf %210, %432 : vector<8x128xf32>
    %434 = arith.addf %431, %433 : vector<8x128xf32>
    %435 = vector.broadcast %85 : f32 to vector<8x128xf32>
    %436 = arith.mulf %219, %435 : vector<8x128xf32>
    %437 = arith.addf %434, %436 : vector<8x128xf32>
    %438 = vector.broadcast %86 : f32 to vector<8x128xf32>
    %439 = arith.mulf %228, %438 : vector<8x128xf32>
    %440 = arith.addf %437, %439 : vector<8x128xf32>
    %441 = vector.broadcast %87 : f32 to vector<8x128xf32>
    %442 = arith.mulf %237, %441 : vector<8x128xf32>
    %443 = arith.addf %440, %442 : vector<8x128xf32>
    %444 = vector.broadcast %88 : f32 to vector<8x128xf32>
    %445 = arith.mulf %246, %444 : vector<8x128xf32>
    %446 = arith.addf %443, %445 : vector<8x128xf32>
    %447 = vector.broadcast %89 : f32 to vector<8x128xf32>
    %448 = arith.mulf %255, %447 : vector<8x128xf32>
    %449 = arith.addf %446, %448 : vector<8x128xf32>
    %450 = vector.broadcast %135 : f32 to vector<8x128xf32>
    %451 = arith.addf %449, %450 : vector<8x128xf32>
    %cst_312 = arith.constant 0.000000e+00 : f32
    %452 = vector.broadcast %cst_312 : f32 to vector<8x128xf32>
    %453 = arith.maximumf %451, %452 : vector<8x128xf32>
    %454 = vector.broadcast %90 : f32 to vector<8x128xf32>
    %455 = arith.mulf %174, %454 : vector<8x128xf32>
    %456 = vector.broadcast %91 : f32 to vector<8x128xf32>
    %457 = arith.mulf %183, %456 : vector<8x128xf32>
    %458 = arith.addf %455, %457 : vector<8x128xf32>
    %459 = vector.broadcast %92 : f32 to vector<8x128xf32>
    %460 = arith.mulf %192, %459 : vector<8x128xf32>
    %461 = arith.addf %458, %460 : vector<8x128xf32>
    %462 = vector.broadcast %93 : f32 to vector<8x128xf32>
    %463 = arith.mulf %201, %462 : vector<8x128xf32>
    %464 = arith.addf %461, %463 : vector<8x128xf32>
    %465 = vector.broadcast %94 : f32 to vector<8x128xf32>
    %466 = arith.mulf %210, %465 : vector<8x128xf32>
    %467 = arith.addf %464, %466 : vector<8x128xf32>
    %468 = vector.broadcast %95 : f32 to vector<8x128xf32>
    %469 = arith.mulf %219, %468 : vector<8x128xf32>
    %470 = arith.addf %467, %469 : vector<8x128xf32>
    %471 = vector.broadcast %96 : f32 to vector<8x128xf32>
    %472 = arith.mulf %228, %471 : vector<8x128xf32>
    %473 = arith.addf %470, %472 : vector<8x128xf32>
    %474 = vector.broadcast %97 : f32 to vector<8x128xf32>
    %475 = arith.mulf %237, %474 : vector<8x128xf32>
    %476 = arith.addf %473, %475 : vector<8x128xf32>
    %477 = vector.broadcast %98 : f32 to vector<8x128xf32>
    %478 = arith.mulf %246, %477 : vector<8x128xf32>
    %479 = arith.addf %476, %478 : vector<8x128xf32>
    %480 = vector.broadcast %99 : f32 to vector<8x128xf32>
    %481 = arith.mulf %255, %480 : vector<8x128xf32>
    %482 = arith.addf %479, %481 : vector<8x128xf32>
    %483 = vector.broadcast %136 : f32 to vector<8x128xf32>
    %484 = arith.addf %482, %483 : vector<8x128xf32>
    %cst_313 = arith.constant 0.000000e+00 : f32
    %485 = vector.broadcast %cst_313 : f32 to vector<8x128xf32>
    %486 = arith.maximumf %484, %485 : vector<8x128xf32>
    %487 = vector.broadcast %100 : f32 to vector<8x128xf32>
    %488 = arith.mulf %174, %487 : vector<8x128xf32>
    %489 = vector.broadcast %101 : f32 to vector<8x128xf32>
    %490 = arith.mulf %183, %489 : vector<8x128xf32>
    %491 = arith.addf %488, %490 : vector<8x128xf32>
    %492 = vector.broadcast %102 : f32 to vector<8x128xf32>
    %493 = arith.mulf %192, %492 : vector<8x128xf32>
    %494 = arith.addf %491, %493 : vector<8x128xf32>
    %495 = vector.broadcast %103 : f32 to vector<8x128xf32>
    %496 = arith.mulf %201, %495 : vector<8x128xf32>
    %497 = arith.addf %494, %496 : vector<8x128xf32>
    %498 = vector.broadcast %104 : f32 to vector<8x128xf32>
    %499 = arith.mulf %210, %498 : vector<8x128xf32>
    %500 = arith.addf %497, %499 : vector<8x128xf32>
    %501 = vector.broadcast %105 : f32 to vector<8x128xf32>
    %502 = arith.mulf %219, %501 : vector<8x128xf32>
    %503 = arith.addf %500, %502 : vector<8x128xf32>
    %504 = vector.broadcast %106 : f32 to vector<8x128xf32>
    %505 = arith.mulf %228, %504 : vector<8x128xf32>
    %506 = arith.addf %503, %505 : vector<8x128xf32>
    %507 = vector.broadcast %107 : f32 to vector<8x128xf32>
    %508 = arith.mulf %237, %507 : vector<8x128xf32>
    %509 = arith.addf %506, %508 : vector<8x128xf32>
    %510 = vector.broadcast %108 : f32 to vector<8x128xf32>
    %511 = arith.mulf %246, %510 : vector<8x128xf32>
    %512 = arith.addf %509, %511 : vector<8x128xf32>
    %513 = vector.broadcast %109 : f32 to vector<8x128xf32>
    %514 = arith.mulf %255, %513 : vector<8x128xf32>
    %515 = arith.addf %512, %514 : vector<8x128xf32>
    %516 = vector.broadcast %137 : f32 to vector<8x128xf32>
    %517 = arith.addf %515, %516 : vector<8x128xf32>
    %cst_314 = arith.constant 0.000000e+00 : f32
    %518 = vector.broadcast %cst_314 : f32 to vector<8x128xf32>
    %519 = arith.maximumf %517, %518 : vector<8x128xf32>
    %520 = vector.broadcast %110 : f32 to vector<8x128xf32>
    %521 = arith.mulf %174, %520 : vector<8x128xf32>
    %522 = vector.broadcast %111 : f32 to vector<8x128xf32>
    %523 = arith.mulf %183, %522 : vector<8x128xf32>
    %524 = arith.addf %521, %523 : vector<8x128xf32>
    %525 = vector.broadcast %112 : f32 to vector<8x128xf32>
    %526 = arith.mulf %192, %525 : vector<8x128xf32>
    %527 = arith.addf %524, %526 : vector<8x128xf32>
    %528 = vector.broadcast %113 : f32 to vector<8x128xf32>
    %529 = arith.mulf %201, %528 : vector<8x128xf32>
    %530 = arith.addf %527, %529 : vector<8x128xf32>
    %531 = vector.broadcast %114 : f32 to vector<8x128xf32>
    %532 = arith.mulf %210, %531 : vector<8x128xf32>
    %533 = arith.addf %530, %532 : vector<8x128xf32>
    %534 = vector.broadcast %115 : f32 to vector<8x128xf32>
    %535 = arith.mulf %219, %534 : vector<8x128xf32>
    %536 = arith.addf %533, %535 : vector<8x128xf32>
    %537 = vector.broadcast %116 : f32 to vector<8x128xf32>
    %538 = arith.mulf %228, %537 : vector<8x128xf32>
    %539 = arith.addf %536, %538 : vector<8x128xf32>
    %540 = vector.broadcast %117 : f32 to vector<8x128xf32>
    %541 = arith.mulf %237, %540 : vector<8x128xf32>
    %542 = arith.addf %539, %541 : vector<8x128xf32>
    %543 = vector.broadcast %118 : f32 to vector<8x128xf32>
    %544 = arith.mulf %246, %543 : vector<8x128xf32>
    %545 = arith.addf %542, %544 : vector<8x128xf32>
    %546 = vector.broadcast %119 : f32 to vector<8x128xf32>
    %547 = arith.mulf %255, %546 : vector<8x128xf32>
    %548 = arith.addf %545, %547 : vector<8x128xf32>
    %549 = vector.broadcast %138 : f32 to vector<8x128xf32>
    %550 = arith.addf %548, %549 : vector<8x128xf32>
    %cst_315 = arith.constant 0.000000e+00 : f32
    %551 = vector.broadcast %cst_315 : f32 to vector<8x128xf32>
    %552 = arith.maximumf %550, %551 : vector<8x128xf32>
    %553 = vector.broadcast %120 : f32 to vector<8x128xf32>
    %554 = arith.mulf %174, %553 : vector<8x128xf32>
    %555 = vector.broadcast %121 : f32 to vector<8x128xf32>
    %556 = arith.mulf %183, %555 : vector<8x128xf32>
    %557 = arith.addf %554, %556 : vector<8x128xf32>
    %558 = vector.broadcast %122 : f32 to vector<8x128xf32>
    %559 = arith.mulf %192, %558 : vector<8x128xf32>
    %560 = arith.addf %557, %559 : vector<8x128xf32>
    %561 = vector.broadcast %123 : f32 to vector<8x128xf32>
    %562 = arith.mulf %201, %561 : vector<8x128xf32>
    %563 = arith.addf %560, %562 : vector<8x128xf32>
    %564 = vector.broadcast %124 : f32 to vector<8x128xf32>
    %565 = arith.mulf %210, %564 : vector<8x128xf32>
    %566 = arith.addf %563, %565 : vector<8x128xf32>
    %567 = vector.broadcast %125 : f32 to vector<8x128xf32>
    %568 = arith.mulf %219, %567 : vector<8x128xf32>
    %569 = arith.addf %566, %568 : vector<8x128xf32>
    %570 = vector.broadcast %126 : f32 to vector<8x128xf32>
    %571 = arith.mulf %228, %570 : vector<8x128xf32>
    %572 = arith.addf %569, %571 : vector<8x128xf32>
    %573 = vector.broadcast %127 : f32 to vector<8x128xf32>
    %574 = arith.mulf %237, %573 : vector<8x128xf32>
    %575 = arith.addf %572, %574 : vector<8x128xf32>
    %576 = vector.broadcast %128 : f32 to vector<8x128xf32>
    %577 = arith.mulf %246, %576 : vector<8x128xf32>
    %578 = arith.addf %575, %577 : vector<8x128xf32>
    %579 = vector.broadcast %129 : f32 to vector<8x128xf32>
    %580 = arith.mulf %255, %579 : vector<8x128xf32>
    %581 = arith.addf %578, %580 : vector<8x128xf32>
    %582 = vector.broadcast %139 : f32 to vector<8x128xf32>
    %583 = arith.addf %581, %582 : vector<8x128xf32>
    %cst_316 = arith.constant 0.000000e+00 : f32
    %584 = vector.broadcast %cst_316 : f32 to vector<8x128xf32>
    %585 = arith.maximumf %583, %584 : vector<8x128xf32>
    %586 = vector.broadcast %140 : f32 to vector<8x128xf32>
    %587 = arith.mulf %288, %586 : vector<8x128xf32>
    %588 = vector.broadcast %141 : f32 to vector<8x128xf32>
    %589 = arith.mulf %321, %588 : vector<8x128xf32>
    %590 = arith.addf %587, %589 : vector<8x128xf32>
    %591 = vector.broadcast %142 : f32 to vector<8x128xf32>
    %592 = arith.mulf %354, %591 : vector<8x128xf32>
    %593 = arith.addf %590, %592 : vector<8x128xf32>
    %594 = vector.broadcast %143 : f32 to vector<8x128xf32>
    %595 = arith.mulf %387, %594 : vector<8x128xf32>
    %596 = arith.addf %593, %595 : vector<8x128xf32>
    %597 = vector.broadcast %144 : f32 to vector<8x128xf32>
    %598 = arith.mulf %420, %597 : vector<8x128xf32>
    %599 = arith.addf %596, %598 : vector<8x128xf32>
    %600 = vector.broadcast %145 : f32 to vector<8x128xf32>
    %601 = arith.mulf %453, %600 : vector<8x128xf32>
    %602 = arith.addf %599, %601 : vector<8x128xf32>
    %603 = vector.broadcast %146 : f32 to vector<8x128xf32>
    %604 = arith.mulf %486, %603 : vector<8x128xf32>
    %605 = arith.addf %602, %604 : vector<8x128xf32>
    %606 = vector.broadcast %147 : f32 to vector<8x128xf32>
    %607 = arith.mulf %519, %606 : vector<8x128xf32>
    %608 = arith.addf %605, %607 : vector<8x128xf32>
    %609 = vector.broadcast %148 : f32 to vector<8x128xf32>
    %610 = arith.mulf %552, %609 : vector<8x128xf32>
    %611 = arith.addf %608, %610 : vector<8x128xf32>
    %612 = vector.broadcast %149 : f32 to vector<8x128xf32>
    %613 = arith.mulf %585, %612 : vector<8x128xf32>
    %614 = arith.addf %611, %613 : vector<8x128xf32>
    %615 = vector.broadcast %160 : f32 to vector<8x128xf32>
    %616 = arith.addf %614, %615 : vector<8x128xf32>
    %c0_317 = arith.constant 0 : index
    %c0_318 = arith.constant 0 : index
    %c0_319 = arith.constant 0 : index
    %617 = vector.load %arg8[%c0_317, %c0_318, %c0_319] : memref<2x8x128xf32, #tpu.memory_space<vmem>>, vector<1x8x128xf32>
    %618 = vector.shape_cast %617 : vector<1x8x128xf32> to vector<8x128xf32>
    %619 = vector.shape_cast %616 : vector<8x128xf32> to vector<1x8x128xf32>
    tpu.vector_store %arg8[%c0_317, %c0_318, %c0_319], %619 {strides = array<i32>} : memref<2x8x128xf32, #tpu.memory_space<vmem>>, vector<1x8x128xf32>,
    %620 = vector.broadcast %150 : f32 to vector<8x128xf32>
    %621 = arith.mulf %288, %620 : vector<8x128xf32>
    %622 = vector.broadcast %151 : f32 to vector<8x128xf32>
    %623 = arith.mulf %321, %622 : vector<8x128xf32>
    %624 = arith.addf %621, %623 : vector<8x128xf32>
    %625 = vector.broadcast %152 : f32 to vector<8x128xf32>
    %626 = arith.mulf %354, %625 : vector<8x128xf32>
    %627 = arith.addf %624, %626 : vector<8x128xf32>
    %628 = vector.broadcast %153 : f32 to vector<8x128xf32>
    %629 = arith.mulf %387, %628 : vector<8x128xf32>
    %630 = arith.addf %627, %629 : vector<8x128xf32>
    %631 = vector.broadcast %154 : f32 to vector<8x128xf32>
    %632 = arith.mulf %420, %631 : vector<8x128xf32>
    %633 = arith.addf %630, %632 : vector<8x128xf32>
    %634 = vector.broadcast %155 : f32 to vector<8x128xf32>
    %635 = arith.mulf %453, %634 : vector<8x128xf32>
    %636 = arith.addf %633, %635 : vector<8x128xf32>
    %637 = vector.broadcast %156 : f32 to vector<8x128xf32>
    %638 = arith.mulf %486, %637 : vector<8x128xf32>
    %639 = arith.addf %636, %638 : vector<8x128xf32>
    %640 = vector.broadcast %157 : f32 to vector<8x128xf32>
    %641 = arith.mulf %519, %640 : vector<8x128xf32>
    %642 = arith.addf %639, %641 : vector<8x128xf32>
    %643 = vector.broadcast %158 : f32 to vector<8x128xf32>
    %644 = arith.mulf %552, %643 : vector<8x128xf32>
    %645 = arith.addf %642, %644 : vector<8x128xf32>
    %646 = vector.broadcast %159 : f32 to vector<8x128xf32>
    %647 = arith.mulf %585, %646 : vector<8x128xf32>
    %648 = arith.addf %645, %647 : vector<8x128xf32>
    %649 = vector.broadcast %161 : f32 to vector<8x128xf32>
    %650 = arith.addf %648, %649 : vector<8x128xf32>
    %c1_320 = arith.constant 1 : index
    %c0_321 = arith.constant 0 : index
    %c0_322 = arith.constant 0 : index
    %651 = vector.load %arg8[%c1_320, %c0_321, %c0_322] : memref<2x8x128xf32, #tpu.memory_space<vmem>>, vector<1x8x128xf32>
    %652 = vector.shape_cast %651 : vector<1x8x128xf32> to vector<8x128xf32>
    %653 = vector.shape_cast %650 : vector<8x128xf32> to vector<1x8x128xf32>
    tpu.vector_store %arg8[%c1_320, %c0_321, %c0_322], %653 {strides = array<i32>} : memref<2x8x128xf32, #tpu.memory_space<vmem>>, vector<1x8x128xf32>,
    return
  }
  func.func @transform_0(%arg0: i32) -> (i32, i32) {
    %c0_i32 = arith.constant 0 : i32
    %c0_i32_0 = arith.constant 0 : i32
    %c0_i32_1 = arith.constant 0 : i32
    return %c0_i32, %c0_i32_0 : i32, i32
  }
  func.func @transform_1(%arg0: i32) -> i32 {
    %c0_i32 = arith.constant 0 : i32
    %c0_i32_0 = arith.constant 0 : i32
    return %c0_i32 : i32
  }
  func.func @transform_2(%arg0: i32) -> (i32, i32) {
    %c0_i32 = arith.constant 0 : i32
    %c0_i32_0 = arith.constant 0 : i32
    %c0_i32_1 = arith.constant 0 : i32
    return %c0_i32, %c0_i32_0 : i32, i32
  }
  func.func @transform_3(%arg0: i32) -> i32 {
    %c0_i32 = arith.constant 0 : i32
    %c0_i32_0 = arith.constant 0 : i32
    return %c0_i32 : i32
  }
  func.func @transform_4(%arg0: i32) -> (i32, i32) {
    %c0_i32 = arith.constant 0 : i32
    %c0_i32_0 = arith.constant 0 : i32
    %c0_i32_1 = arith.constant 0 : i32
    return %c0_i32, %c0_i32_0 : i32, i32
  }
  func.func @transform_5(%arg0: i32) -> i32 {
    %c0_i32 = arith.constant 0 : i32
    %c0_i32_0 = arith.constant 0 : i32
    return %c0_i32 : i32
  }
  func.func @transform_6(%arg0: i32) -> (i32, i32, i32) {
    %c0_i32 = arith.constant 0 : i32
    %c0_i32_0 = arith.constant 0 : i32
    %c0_i32_1 = arith.constant 0 : i32
    return %c0_i32, %arg0, %c0_i32_0 : i32, i32, i32
  }
  func.func @transform_7(%arg0: i32) -> (i32, i32, i32) {
    %c0_i32 = arith.constant 0 : i32
    %c0_i32_0 = arith.constant 0 : i32
    %c0_i32_1 = arith.constant 0 : i32
    return %c0_i32, %arg0, %c0_i32_0 : i32, i32, i32
  }
}

</mosaic_0001>

<bundles_post_ra>
// kernel: tpu_custom_call.1
= control target key start
LH: loop header
LB: loop body
LE: loop exit
PB: predicated region body
PF: predicated region fallthrough
CT: control target
= control target key end

     0   :  { %s1832_s0 = inlined_call_operand.vmem [shape: f32[10,2], index: 0, kind: input, shape index: {}]   ;;  %s1833_s1 = inlined_call_operand.vmem [shape: f32[10], index: 1, kind: input, shape index: {}]   ;;  %s1834_s2 = inlined_call_operand.vmem [shape: f32[10,10], index: 2, kind: input, shape index: {}]   ;;  %s1835_s3 = inlined_call_operand.vmem [shape: f32[10], index: 3, kind: input, shape index: {}]   ;;  %s1836_s4 = inlined_call_operand.vmem [shape: f32[2,10], index: 4, kind: input, shape index: {}]   ;;  %s1837_s5 = inlined_call_operand.vmem [shape: f32[2], index: 5, kind: input, shape index: {}]   ;;  %s1838_s6 = inlined_call_operand.hbm [shape: f32[2,8,128], index: 6, kind: input, shape index: {}]   ;;  %s1839_s7 = inlined_call_operand.hbm [shape: f32[2,8,128], index: 7, kind: output, shape index: {}]  }
   0x1   :  { %1842 = sst [smem:[#allocation47_spill]] %s1839_s7 }
   0x2   :  { %12 = vsyncpa [#allocation5], 0 }
   0x3   :  { %13 = vsyncpa [#allocation7], 0 }
   0x4   :  { %14 = vsyncpa [#allocation10], 0 }
   0x5   :  { %15 = vsyncpa [#allocation13], 0 }
   0x6   :  { %16 = vsyncpa [#allocation3], 0  ;;  %s34_s26 = sshll.u32 %s1833_s1, 4  ;;  %s35_s26 = int_to_ptr.vmem [resolvable:$true] %s34_s26 }
   0x7   :  { %17 = vsyncpa [#allocation4], 0  ;;  %s54_s29 = sshll.u32 %s1835_s3, 4  ;;  %s1069_s30 = smov [#allocation6]   ;;  %s55_s29 = int_to_ptr.vmem [resolvable:$true] %s54_s29 }
   0x8   :  { %37 = dma.vmem_to_smem %s35_s26, 16, %s1069_s30, [#allocation7]  }
   0x9   :  { %s1070_s8 = smov [#allocation9]   ;;  %s22_s11 = sshll.u32 %s1832_s0, 4  ;;  %s23_s11 = int_to_ptr.vmem [resolvable:$true] %s22_s11 }
   0xa   :  { %57 = dma.vmem_to_smem %s55_s29, 16, %s1070_s8, [#allocation10]  }
   0xb   :  { %s42_s1 = sshll.u32 %s1834_s2, 4  ;;  %s1071_s14 = smov [#allocation2]   ;;  %s43_s1 = int_to_ptr.vmem [resolvable:$true] %s42_s1 }
   0xc   :  { %s1840_s15 = smov 128   ;;  %s1841_s16 = smov 8  }
   0xd   :  { %28 = dma.vmem_to_smem %s23_s11, 256, %s1071_s14, [#allocation5], %s1840_s15, %s1840_s15, %s1841_s16  }
   0xe   :  { %s1074_s3 = smov [#allocation8]   ;;  %s63_s18 = sshll.u32 %s1836_s4, 4  ;;  %s64_s18 = int_to_ptr.vmem [resolvable:$true] %s63_s18 }
   0xf   :  { %48 = dma.vmem_to_smem %s43_s1, 256, %s1074_s3, [#allocation7], %s1840_s15, %s1840_s15, %s1841_s16  }
  0x10   :  { %s72_s20 = sshll.u32 %s1837_s5, 4  ;;  %s1075_s21 = smov [#allocation11]   ;;  %s73_s20 = int_to_ptr.vmem [resolvable:$true] %s72_s20 }
  0x11   :  { %66 = dma.vmem_to_smem %s64_s18, 32, %s1075_s21, [#allocation10]  }
  0x12   :  { %s1076_s22 = smov [#allocation12]   ;;  %s80_s25 = sshll.u32 %s1838_s6, 4  ;;  %s81_s25 = int_to_ptr.hbm [resolvable:$true] %s80_s25 }
  0x13   :  { %75 = dma.vmem_to_smem %s73_s20, 16, %s1076_s22, [#allocation13]  }
  0x14   :  { %s1077_s26 = smov [#allocation14]  }
  0x15   :  { %s82_s27 = sshll.u32 %s1077_s26, 4  ;;  %s83_s27 = int_to_ptr.vmem [resolvable:$true] %s82_s27 }
  0x16   :  { %88 = dma.hbm_to_vmem [thread:$0]  %s81_s25, 256, %s83_s27, [#allocation3], %s1840_s15, %s1840_s15, %s1841_s16  }
  0x17   :  { %1057 = dma.done.wait [#allocation5], 256  }
  0x18   :  { %1058 = vsyncadd [#allocation5], 4294967040 }
  0x19   :  { %1059 = dma.done.wait [#allocation7], 272  }
  0x1a   :  { %1060 = vsyncadd [#allocation7], 4294967024 }
  0x1b   :  { %1061 = dma.done.wait [#allocation10], 48  }
  0x1c   :  { %1062 = vsyncadd [#allocation10], 4294967248 }
  0x1d   :  { %1063 = dma.done.wait [#allocation13], 16  }
  0x1e   :  { %1064 = vsyncadd [#allocation13], 4294967280 }
  0x1f   :  { %1065 = dma.done.wait [#allocation3], 256  }
  0x20   :  { %1066 = vsyncadd [#allocation3], 4294967040 }
  0x21   :  { %117 = sfence }
  0x22   :  { %s1149_s4 = sld [smem:[#allocation2]]  ;;  %v1257_v0 = vld [vmem:[#allocation14] sm:$0xff]  ;;  %v1259_v1 = vld [vmem:[#allocation14 + $0x8] sm:$0xff] }
  0x23   :  { %s1151_s5 = sld [smem:[#allocation2 + $0x1]] }
  0x24   :  { %s1153_s6 = sld [smem:[#allocation2 + $0x80]] }
  0x25   :  { %s1155_s28 = sld [smem:[#allocation2 + $0x81]] }
  0x26   :  { %s1157_s29 = sld [smem:[#allocation2 + $0x100]] }
  0x27   :  { %s1159_s30 = sld [smem:[#allocation2 + $0x101]] }
  0x28   :  { %s1161_s8 = sld [smem:[#allocation2 + $0x180]]  ;;  %v283_v2 = vstv %s1149_s4 }
  0x29   :  { %s1163_s9 = sld [smem:[#allocation2 + $0x181]]  ;;  %v285_v3 = vstv %s1151_s5  ;;  %v284_v6 = vmul.f32 %v283_v2, %v1257_v0 }
  0x2a   :  { %s1165_s10 = sld [smem:[#allocation2 + $0x200]]  ;;  %v291_v4 = vstv %s1153_s6  ;;  %v286_v7 = vmul.f32 %v285_v3, %v1259_v1 }
  0x2b   :  { %s1167_s11 = sld [smem:[#allocation2 + $0x201]]  ;;  %v293_v5 = vstv %s1155_s28  ;;  %v292_v8 = vmul.f32 %v291_v4, %v1257_v0 }
  0x2c   :  { %s1169_s12 = sld [smem:[#allocation2 + $0x280]]  ;;  %v294_v9 = vmul.f32 %v293_v5, %v1259_v1  ;;  %v299_v10 = vstv %s1157_s29  ;;  %v287_v12 = vadd.f32 %v286_v7, %v284_v6 }
  0x2d   :  { %s1171_s13 = sld [smem:[#allocation2 + $0x281]]  ;;  %v301_v11 = vstv %s1159_s30  ;;  %v300_v14 = vmul.f32 %v299_v10, %v1257_v0 }
  0x2e   :  { %s1173_s1 = sld [smem:[#allocation2 + $0x300]]  ;;  %v295_v13 = vadd.f32 %v294_v9, %v292_v8  ;;  %v302_v15 = vmul.f32 %v301_v11, %v1259_v1  ;;  %v307_v18 = vstv %s1161_s8 }
  0x2f   :  { %s1175_s14 = sld [smem:[#allocation2 + $0x301]]  ;;  %v309_v19 = vstv %s1163_s9  ;;  %v308_v23 = vmul.f32 %v307_v18, %v1257_v0 }
  0x30   :  { %s1177_s3 = sld [smem:[#allocation2 + $0x380]]  ;;  %v303_v22 = vadd.f32 %v302_v15, %v300_v14  ;;  %v310_v25 = vmul.f32 %v309_v19, %v1259_v1  ;;  %v315_v26 = vstv %s1165_s10 }
  0x31   :  { %s1179_s17 = sld [smem:[#allocation2 + $0x381]]  ;;  %v317_v27 = vstv %s1167_s11  ;;  %v316_v30 = vmul.f32 %v315_v26, %v1257_v0 }
  0x32   :  { %s1181_s0 = sld [smem:[#allocation2 + $0x400]]  ;;  %v311_v31 = vadd.f32 %v310_v25, %v308_v23  ;;  %v318_v33 = vmul.f32 %v317_v27, %v1259_v1  ;;  %v323_v34 = vstv %s1169_s12 }
  0x33   :  { %s1183_s18 = sld [smem:[#allocation2 + $0x401]]  ;;  %v324_v35 = vmul.f32 %v323_v34, %v1257_v0  ;;  %v325_v36 = vstv %s1171_s13 }
  0x34   :  { %s1185_s19 = sld [smem:[#allocation2 + $0x480]]  ;;  %v319_v40 = vadd.f32 %v318_v33, %v316_v30  ;;  %v326_v41 = vmul.f32 %v325_v36, %v1259_v1  ;;  %v331_v44 = vstv %s1173_s1 }
  0x35   :  { %s1187_s2 = sld [smem:[#allocation2 + $0x481]]  ;;  %v333_v45 = vstv %s1175_s14  ;;  %v332_v50 = vmul.f32 %v331_v44, %v1257_v0 }
  0x36   :  { %1843 = sst [smem:[#allocation22_spill]] %s1177_s3  ;;  %v327_v46 = vadd.f32 %v326_v41, %v324_v35  ;;  %v334_v51 = vmul.f32 %v333_v45, %v1259_v1 }
  0x37   :  { %1844 = sst [smem:[#allocation23_spill]] %s1179_s17 }
  0x38   :  { %1845 = sst [smem:[#allocation24_spill]] %s1181_s0  ;;  %v335_v58 = vadd.f32 %v334_v51, %v332_v50 }
  0x39   :  { %1846 = sst [smem:[#allocation25_spill]] %s1183_s18 }
  0x3a   :  { %1847 = sst [smem:[#allocation26_spill]] %s1185_s19 }
  0x3b   :  { %1848 = sst [smem:[#allocation27_spill]] %s1187_s2 }
  0x3c   :  { %s1189_s20 = sld [smem:[#allocation6]] }
  0x3d   :  { %s1191_s21 = sld [smem:[#allocation6 + $0x1]] }
  0x3e   :  { %s1193_s22 = sld [smem:[#allocation6 + $0x2]] }
  0x3f   :  { %s1195_s23 = sld [smem:[#allocation6 + $0x3]] }
  0x40   :  { %s1197_s24 = sld [smem:[#allocation6 + $0x4]] }
  0x41   :  { %s1199_s25 = sld [smem:[#allocation6 + $0x5]] }
  0x42   :  { %s1201_s26 = sld [smem:[#allocation6 + $0x6]]  ;;  %v288_v16 = vstv %s1189_s20 }
  0x43   :  { %s1203_s27 = sld [smem:[#allocation6 + $0x7]]  ;;  %v296_v17 = vstv %s1191_s21  ;;  %v289_v20 = vadd.f32 %v288_v16, %v287_v12 }
  0x44   :  { %s1205_s15 = sld [smem:[#allocation6 + $0x8]]  ;;  %v297_v21 = vadd.f32 %v296_v17, %v295_v13  ;;  %v304_v24 = vstv %s1193_s22 }
  0x45   :  { %s1207_s16 = sld [smem:[#allocation6 + $0x9]]  ;;  %v1296_v28 = vmax.f32 %v289_v20, 0.0  ;;  %v305_v29 = vadd.f32 %v304_v24, %v303_v22  ;;  %v312_v32 = vstv %s1195_s23 }
  0x46   :  { %s1209_s7 = sld [smem:[#allocation8]]  ;;  %v1311_v38 = vmax.f32 %v297_v21, 0.0  ;;  %v313_v42 = vadd.f32 %v312_v32, %v311_v31  ;;  %v320_v43 = vstv %s1197_s24 }
  0x47   :  { %s1211_s2 = sld [smem:[#allocation8 + $0x1]]  ;;  %v1313_v39 = vmax.f32 %v305_v29, 0.0  ;;  %v328_v47 = vstv %s1199_s25  ;;  %v321_v54 = vadd.f32 %v320_v43, %v319_v40 }
  0x48   :  { %1849 = sst [smem:[#allocation28_spill]] %s1201_s26  ;;  %v329_v55 = vadd.f32 %v328_v47, %v327_v46  ;;  %v1343_v62 = vmax.f32 %v313_v42, 0.0 }
  0x49   :  { %1850 = sst [smem:[#allocation29_spill]] %s1203_s27  ;;  %v1359_v12 = vmax.f32 %v321_v54, 0.0 }
  0x4a   :  { %1851 = sst [smem:[#allocation30_spill]] %s1205_s15  ;;  %v1361_v13 = vmax.f32 %v329_v55, 0.0 }
  0x4b   :  { %1852 = sst [smem:[#allocation31_spill]] %s1207_s16 }
  0x4c   :  { %s1213_s19 = sld [smem:[#allocation8 + $0x2]]  ;;  %v363_v37 = vstv %s1209_s7 }
  0x4d   :  { %1853 = sst [smem:[#allocation32_spill]] %s1211_s2  ;;  %v364_v48 = vmul.f32 %v363_v37, %v1296_v28 }
  0x4e   :  { %s1215_s18 = sld [smem:[#allocation8 + $0x3]] }
  0x4f   :  { %s1217_s0 = sld [smem:[#allocation8 + $0x4]] }
  0x50   :  { %s1219_s17 = sld [smem:[#allocation8 + $0x5]] }
  0x51   :  { %s1221_s3 = sld [smem:[#allocation8 + $0x6]] }
  0x52   :  { %1854 = sst [smem:[#allocation33_spill]] %s1213_s19 }
  0x53   :  { %s1223_s26 = sld [smem:[#allocation8 + $0x7]] }
  0x54   :  { %1855 = sst [smem:[#allocation34_spill]] %s1215_s18 }
  0x55   :  { %1856 = sst [smem:[#allocation35_spill]] %s1217_s0 }
  0x56   :  { %1857 = sst [smem:[#allocation36_spill]] %s1219_s17 }
  0x57   :  { %1858 = sst [smem:[#allocation37_spill]] %s1221_s3 }
  0x58   :  { %s1225_s27 = sld [smem:[#allocation8 + $0x8]] }
  0x59   :  { %1859 = sst [smem:[#allocation38_spill]] %s1223_s26 }
  0x5a   :  { %s1227_s15 = sld [smem:[#allocation8 + $0x9]] }
  0x5b   :  { %s1229_s16 = sld [smem:[#allocation8 + $0x80]] }
  0x5c   :  { %s1231_s2 = sld [smem:[#allocation8 + $0x81]] }
  0x5d   :  { %s1233_s19 = sld [smem:[#allocation8 + $0x82]] }
  0x5e   :  { %1860 = sst [smem:[#allocation39_spill]] %s1225_s27 }
  0x5f   :  { %s1235_s0 = sld [smem:[#allocation8 + $0x83]] }
  0x60   :  { %1861 = sst [smem:[#allocation40_spill]] %s1227_s15 }
  0x61   :  { %1862 = sst [smem:[#allocation41_spill]] %s1229_s16 }
  0x62   :  { %1863 = sst [smem:[#allocation42_spill]] %s1231_s2 }
  0x63   :  { %1864 = sst [smem:[#allocation43_spill]] %s1233_s19 }
  0x64   :  { %s1237_s17 = sld [smem:[#allocation8 + $0x84]] }
  0x65   :  { %1865 = sst [smem:[#allocation44_spill]] %s1235_s0 }
  0x66   :  { %s1239_s3 = sld [smem:[#allocation8 + $0x85]] }
  0x67   :  { %s1241_s26 = sld [smem:[#allocation8 + $0x86]] }
  0x68   :  { %s1243_s27 = sld [smem:[#allocation8 + $0x87]] }
  0x69   :  { %s1245_s15 = sld [smem:[#allocation8 + $0x88]] }
  0x6a   :  { %s1247_s16 = sld [smem:[#allocation8 + $0x89]] }
  0x6b   :  { %s1249_s2 = sld [smem:[#allocation8 + $0x100]] }
  0x6c   :  { %s1251_s19 = sld [smem:[#allocation8 + $0x101]] }
  0x6d   :  { %s1253_s0 = sld [smem:[#allocation8 + $0x102]] }
  0x6e   :  { %s1255_s18 = sld [smem:[#allocation8 + $0x103]] }
  0x6f   :  { %s1275_s4 = sld [smem:[#allocation8 + $0x106]] }
  0x70   :  { %1866 = sst [smem:[#allocation45_spill]] %s1247_s16 }
  0x71   :  { %s1265_s16 = sld [smem:[#allocation8 + $0x104]] }
  0x72   :  { %s1279_s5 = sld [smem:[#allocation8 + $0x107]] }
  0x73   :  { %s1285_s6 = sld [smem:[#allocation8 + $0x108]] }
  0x74   :  { %1867 = sst [smem:[#allocation46_spill]] %s1255_s18 }
  0x75   :  { %s1271_s18 = sld [smem:[#allocation8 + $0x105]] }
  0x76   :  { %s1288_s28 = sld [smem:[#allocation8 + $0x109]] }
  0x77   :  { %s1294_s29 = sld [smem:[#allocation8 + $0x180]] }
  0x78   :  { %s1299_s30 = sld [smem:[#allocation8 + $0x181]] }
  0x79   :  { %s1304_s8 = sld [smem:[#allocation8 + $0x182]] }
  0x7a   :  { %s1868_s9 = sld [smem:[#allocation32_spill]] }
  0x7b   :  { %s1309_s10 = sld [smem:[#allocation8 + $0x183]] }
  0x7c   :  { %s1869_s11 = sld [smem:[#allocation22_spill]] }
  0x7d   :  { %s1870_s20 = sld [smem:[#allocation23_spill]] }
  0x7e   :  { %s1316_s12 = sld [smem:[#allocation8 + $0x184]] }
  0x7f   :  { %s1872_s21 = sld [smem:[#allocation28_spill]] }
  0x80   :  { %s1321_s13 = sld [smem:[#allocation8 + $0x185]]  ;;  %v365_v49 = vstv %s1868_s9 }
  0x81   :  { %s1873_s7 = sld [smem:[#allocation24_spill]]  ;;  %v366_v14 = vmul.f32 %v365_v49, %v1311_v38  ;;  %v409_v49 = vstv %s1239_s3 }
  0x82   :  { %s1874_s22 = sld [smem:[#allocation25_spill]]  ;;  %v339_v52 = vstv %s1869_s11 }
  0x83   :  { %s1326_s23 = sld [smem:[#allocation8 + $0x186]]  ;;  %v341_v53 = vstv %s1870_s20  ;;  %v340_v57 = vmul.f32 %v339_v52, %v1257_v0  ;;  %v367_v19 = vadd.f32 %v366_v14, %v364_v48  ;;  %v406_v48 = vstv %s1237_s17 }
  0x84   :  { %1871 = sst [smem:[#allocation32_spill]] %s1316_s12  ;;  %v342_v59 = vmul.f32 %v341_v53, %v1259_v1  ;;  %v438_v14 = vstv %s1265_s16 }
  0x85   :  { %s1876_s12 = sld [smem:[#allocation29_spill]]  ;;  %v336_v56 = vstv %s1872_s21 }
  0x86   :  { %s1332_s1 = sld [smem:[#allocation8 + $0x187]]  ;;  %v337_v4 = vadd.f32 %v336_v56, %v335_v58  ;;  %v343_v5 = vadd.f32 %v342_v59, %v340_v57  ;;  %v407_v56 = vmul.f32 %v406_v48, %v1359_v12  ;;  %v412_v57 = vstv %s1241_s26 }
  0x87   :  { %s1878_s14 = sld [smem:[#allocation26_spill]]  ;;  %v347_v60 = vstv %s1873_s7 }
  0x88   :  { %s1879_s24 = sld [smem:[#allocation27_spill]]  ;;  %v349_v61 = vstv %s1874_s22  ;;  %v348_v2 = vmul.f32 %v347_v60, %v1257_v0  ;;  %v1375_v22 = vmax.f32 %v337_v4, 0.0  ;;  %v410_v60 = vmul.f32 %v409_v49, %v1361_v13 }
  0x89   :  { %1875 = sst [smem:[#allocation22_spill]] %s1326_s23  ;;  %v350_v3 = vmul.f32 %v349_v61, %v1259_v1  ;;  %v415_v61 = vstv %s1243_s27  ;;  %v429_v4 = vstv %s1251_s19  ;;  %v453_v49 = vstv %s1288_s28 }
  0x8a   :  { %s1336_s25 = sld [smem:[#allocation8 + $0x188]] }
  0x8b   :  { %s1881_s9 = sld [smem:[#allocation30_spill]]  ;;  %v344_v63 = vstv %s1876_s12  ;;  %v351_v8 = vadd.f32 %v350_v3, %v348_v2  ;;  %v427_v3 = vstv %s1249_s2 }
  0x8c   :  { %1877 = sst [smem:[#allocation23_spill]] %s1332_s1  ;;  %v345_v16 = vadd.f32 %v344_v63, %v343_v5  ;;  %v418_v63 = vstv %s1245_s15 }
  0x8d   :  { %s1341_s23 = sld [smem:[#allocation8 + $0x189]]  ;;  %v355_v6 = vstv %s1878_s14 }
  0x8e   :  { %s1883_s11 = sld [smem:[#allocation33_spill]]  ;;  %v357_v7 = vstv %s1879_s24  ;;  %v356_v10 = vmul.f32 %v355_v6, %v1257_v0  ;;  %v1385_v29 = vmax.f32 %v345_v16, 0.0  ;;  %v413_v6 = vmul.f32 %v412_v57, %v1375_v22 }
  0x8f   :  { %s1348_s20 = sld [smem:[#allocation8 + $0x200]]  ;;  %v358_v11 = vmul.f32 %v357_v7, %v1259_v1  ;;  %v428_v7 = vmul.f32 %v427_v3, %v1296_v28 }
  0x90   :  { %1880 = sst [smem:[#allocation28_spill]] %s1336_s25 }
  0x91   :  { %s1352_s21 = sld [smem:[#allocation8 + $0x201]]  ;;  %v352_v9 = vstv %s1881_s9  ;;  %v359_v18 = vadd.f32 %v358_v11, %v356_v10  ;;  %v432_v10 = vstv %s1253_s0 }
  0x92   :  { %s1886_s7 = sld [smem:[#allocation31_spill]]  ;;  %v353_v17 = vadd.f32 %v352_v9, %v351_v8  ;;  %v430_v8 = vmul.f32 %v429_v4, %v1311_v38 }
  0x93   :  { %1882 = sst [smem:[#allocation24_spill]] %s1341_s23 }
  0x94   :  { %s1887_s22 = sld [smem:[#allocation34_spill]]  ;;  %v368_v15 = vstv %s1883_s11  ;;  %v1387_v30 = vmax.f32 %v353_v17, 0.0  ;;  %v431_v16 = vadd.f32 %v430_v8, %v428_v7  ;;  %v433_v17 = vmul.f32 %v432_v10, %v1313_v39 }
  0x95   :  { %1884 = sst [smem:[#allocation25_spill]] %s1348_s20  ;;  %v369_v0 = vmul.f32 %v368_v15, %v1313_v39 }
  0x96   :  { %s1888_s12 = sld [smem:[#allocation35_spill]] }
  0x97   :  { %1885 = sst [smem:[#allocation29_spill]] %s1352_s21  ;;  %v370_v24 = vadd.f32 %v369_v0, %v367_v19 }
  0x98   :  { %s1357_s23 = sld [smem:[#allocation8 + $0x202]]  ;;  %v360_v1 = vstv %s1886_s7 }
  0x99   :  { %s1365_s14 = sld [smem:[#allocation8 + $0x203]]  ;;  %v361_v31 = vadd.f32 %v360_v1, %v359_v18  ;;  %v441_v18 = vstv %s1271_s18  ;;  %v416_v1 = vmul.f32 %v415_v61, %v1385_v29 }
  0x9a   :  { %s1891_s24 = sld [smem:[#allocation36_spill]]  ;;  %v371_v20 = vstv %s1887_s22 }
  0x9b   :  { %s1892_s9 = sld [smem:[#allocation37_spill]]  ;;  %v372_v23 = vmul.f32 %v371_v20, %v1343_v62  ;;  %v1407_v46 = vmax.f32 %v361_v31, 0.0  ;;  %v444_v20 = vstv %s1275_s4  ;;  %v442_v31 = vmul.f32 %v441_v18, %v1361_v13 }
  0x9c   :  { %s1368_s21 = sld [smem:[#allocation8 + $0x204]]  ;;  %v374_v21 = vstv %s1888_s12 }
  0x9d   :  { %s1373_s25 = sld [smem:[#allocation8 + $0x205]]  ;;  %v375_v25 = vmul.f32 %v374_v21, %v1359_v12  ;;  %v373_v32 = vadd.f32 %v372_v23, %v370_v24  ;;  %v419_v23 = vmul.f32 %v418_v63, %v1387_v30  ;;  %v434_v24 = vadd.f32 %v433_v17, %v431_v16 }
  0x9e   :  { %1889 = sst [smem:[#allocation26_spill]] %s1357_s23  ;;  %v454_v4 = vmul.f32 %v453_v49, %v1407_v46 }
  0x9f   :  { %1890 = sst [smem:[#allocation27_spill]] %s1365_s14  ;;  %v376_v42 = vadd.f32 %v375_v25, %v373_v32  ;;  %v439_v25 = vmul.f32 %v438_v14, %v1359_v12  ;;  %v459_v32 = vstv %s1294_s29 }
  0xa0   :  { %s1893_s23 = sld [smem:[#allocation38_spill]]  ;;  %v377_v26 = vstv %s1891_s24 }
  0xa1   :  { %s1895_s20 = sld [smem:[#allocation41_spill]]  ;;  %v380_v27 = vstv %s1892_s9  ;;  %v378_v33 = vmul.f32 %v377_v26, %v1361_v13 }
  0xa2   :  { %s1378_s11 = sld [smem:[#allocation8 + $0x206]]  ;;  %v381_v36 = vmul.f32 %v380_v27, %v1375_v22 }
  0xa3   :  { %1894 = sst [smem:[#allocation30_spill]] %s1373_s25  ;;  %v379_v50 = vadd.f32 %v378_v33, %v376_v42  ;;  %v464_v42 = vstv %s1304_s8 }
  0xa4   :  { %s1896_s14 = sld [smem:[#allocation39_spill]] }
  0xa5   :  { %s1897_s1 = sld [smem:[#allocation42_spill]]  ;;  %v382_v58 = vadd.f32 %v381_v36, %v379_v50  ;;  %v447_v36 = vstv %s1279_s5  ;;  %v467_v50 = vstv %s1309_s10 }
  0xa6   :  { %s1383_s7 = sld [smem:[#allocation8 + $0x207]]  ;;  %v383_v34 = vstv %s1893_s23 }
  0xa7   :  { %s1898_s22 = sld [smem:[#allocation43_spill]]  ;;  %v395_v35 = vstv %s1895_s20  ;;  %v384_v51 = vmul.f32 %v383_v34, %v1385_v29 }
  0xa8   :  { %s1899_s12 = sld [smem:[#allocation44_spill]]  ;;  %v396_v40 = vmul.f32 %v395_v35, %v1296_v28  ;;  %v445_v35 = vmul.f32 %v444_v20, %v1375_v22 }
  0xa9   :  { %s1389_s25 = sld [smem:[#allocation8 + $0x208]]  ;;  %v385_v9 = vadd.f32 %v384_v51, %v382_v58  ;;  %v468_v58 = vmul.f32 %v467_v50, %v1343_v62 }
  0xaa   :  { %s1394_s24 = sld [smem:[#allocation8 + $0x209]]  ;;  %v386_v37 = vstv %s1896_s14 }
  0xab   :  { %v397_v41 = vstv %s1897_s1  ;;  %s1400_s9 = sld [smem:[#allocation8 + $0x280]]  ;;  %v387_v54 = vmul.f32 %v386_v37, %v1387_v30  ;;  %v450_v37 = vstv %s1285_s6 }
  0xac   :  { %v398_v43 = vmul.f32 %v397_v41, %v1311_v38  ;;  %s1405_s23 = sld [smem:[#allocation8 + $0x281]]  ;;  %v461_v41 = vstv %s1299_s30  ;;  %v451_v57 = vmul.f32 %v450_v37, %v1387_v30  ;;  %v508_v37 = vstv %s1378_s11 }
  0xad   :  { %v400_v44 = vstv %s1898_s22  ;;  %s1412_s20 = sld [smem:[#allocation8 + $0x282]]  ;;  %v388_v26 = vadd.f32 %v387_v54, %v385_v9  ;;  %v448_v54 = vmul.f32 %v447_v36, %v1385_v29  ;;  %v509_v49 = vmul.f32 %v508_v37, %v1375_v22 }
  0xae   :  { %v403_v45 = vstv %s1899_s12  ;;  %v401_v47 = vmul.f32 %v400_v44, %v1313_v39  ;;  %s1902_s1 = sld [smem:[#allocation45_spill]]  ;;  %v399_v52 = vadd.f32 %v398_v43, %v396_v40  ;;  %v460_v40 = vmul.f32 %v459_v32, %v1296_v28 }
  0xaf   :  { %1900 = sst [smem:[#allocation33_spill]] %s1389_s25  ;;  %v404_v53 = vmul.f32 %v403_v45, %v1343_v62  ;;  %v462_v45 = vmul.f32 %v461_v41, %v1311_v38  ;;  %v502_v32 = vstv %s1368_s21  ;;  %v511_v50 = vstv %s1383_s7 }
  0xb0   :  { %s1901_s25 = sld [smem:[#allocation40_spill]]  ;;  %v402_v59 = vadd.f32 %v401_v47, %v399_v52  ;;  %v465_v47 = vmul.f32 %v464_v42, %v1313_v39 }
  0xb1   :  { %s1416_s14 = sld [smem:[#allocation8 + $0x283]] }
  0xb2   :  { %s1422_s3 = sld [smem:[#allocation8 + $0x284]]  ;;  %v405_v5 = vadd.f32 %v404_v53, %v402_v59  ;;  %v473_v59 = vstv %s1321_s13 }
  0xb3   :  { %s1903_s17 = sld [smem:[#allocation46_spill]]  ;;  %v474_v9 = vmul.f32 %v473_v59, %v1361_v13 }
  0xb4   :  { %s1426_s22 = sld [smem:[#allocation8 + $0x285]]  ;;  %v421_v2 = vstv %s1902_s1  ;;  %v408_v15 = vadd.f32 %v407_v56, %v405_v5 }
  0xb5   :  { %s1437_s26 = sld [smem:[#allocation8 + $0x287]]  ;;  %v422_v27 = vmul.f32 %v421_v2, %v1407_v46 }
  0xb6   :  { %v389_v55 = vstv %s1901_s25  ;;  %s1432_s25 = sld [smem:[#allocation8 + $0x286]]  ;;  %v411_v21 = vadd.f32 %v410_v60, %v408_v15 }
  0xb7   :  { %s1442_s15 = sld [smem:[#allocation8 + $0x288]]  ;;  %v390_v0 = vmul.f32 %v389_v55, %v1407_v46  ;;  %v463_v55 = vadd.f32 %v462_v45, %v460_v40  ;;  %v531_v59 = vstv %s1416_s14 }
  0xb8   :  { %s1446_s19 = sld [smem:[#allocation8 + $0x289]]  ;;  %v414_v33 = vadd.f32 %v413_v6, %v411_v21 }
  0xb9   :  { %v435_v11 = vstv %s1903_s17  ;;  %s1452_s0 = sld [smem:[#allocation9]]  ;;  %v391_v48 = vadd.f32 %v390_v0, %v388_v26  ;;  %v466_v61 = vadd.f32 %v465_v47, %v463_v55  ;;  %v503_v47 = vmul.f32 %v502_v32, %v1359_v12 }
  0xba   :  { %v436_v19 = vmul.f32 %v435_v11, %v1343_v62  ;;  %s1456_s16 = sld [smem:[#allocation8 + $0x300]]  ;;  %v417_v43 = vadd.f32 %v416_v1, %v414_v33  ;;  %v517_v55 = vstv %s1394_s24 }
  0xbb   :  { %s1461_s18 = sld [smem:[#allocation9 + $0x1]]  ;;  %v469_v8 = vadd.f32 %v468_v58, %v466_v61  ;;  %v528_v58 = vstv %s1412_s20 }
  0xbc   :  { %v437_v34 = vadd.f32 %v436_v19, %v434_v24  ;;  %s1904_s2 = sld [smem:[#allocation32_spill]]  ;;  %v420_v56 = vadd.f32 %v419_v23, %v417_v43 }
  0xbd   :  { %s1465_s27 = sld [smem:[#allocation9 + $0x2]] }
  0xbe   :  { %s1471_s4 = sld [smem:[#allocation8 + $0x301]]  ;;  %v440_v44 = vadd.f32 %v439_v25, %v437_v34  ;;  %v423_v10 = vadd.f32 %v422_v27, %v420_v56  ;;  %v549_v32 = vstv %s1446_s19 }
  0xbf   :  { %s1475_s29 = sld [smem:[#allocation8 + $0x302]]  ;;  %v392_v52 = vstv %s1452_s0 }
  0xc0   :  { %s1905_s5 = sld [smem:[#allocation22_spill]]  ;;  %v443_v53 = vadd.f32 %v442_v31, %v440_v44  ;;  %v1495_v3 = vadd.f32 %v392_v52, %v391_v48 }
  0xc1   :  { %s1480_s6 = sld [smem:[#allocation8 + $0x303]]  ;;  %v424_v6 = vstv %s1461_s18 }
  0xc2   :  { %v470_v51 = vstv %s1904_s2  ;;  %s1906_s30 = sld [smem:[#allocation23_spill]]  ;;  %v446_v60 = vadd.f32 %v445_v35, %v443_v53  ;;  %v394_v40 = vmax.f32 %v1495_v3, 0.0  ;;  %v1535_v41 = vadd.f32 %v424_v6, %v423_v10 }
  0xc3   :  { %s1484_s8 = sld [smem:[#allocation8 + $0x304]]  ;;  %v471_v63 = vmul.f32 %v470_v51, %v1359_v12  ;;  %v456_v11 = vstv %s1465_s27  ;;  %v523_v51 = vstv %s1400_s9  ;;  %v532_v6 = vmul.f32 %v531_v59, %v1343_v62 }
  0xc4   :  { %s1489_s28 = sld [smem:[#allocation8 + $0x305]]  ;;  %v449_v7 = vadd.f32 %v448_v54, %v446_v60  ;;  %v524_v56 = vmul.f32 %v523_v51, %v1296_v28  ;;  %v537_v10 = vstv %s1426_s22 }
  0xc5   :  { %s1908_s10 = sld [smem:[#allocation25_spill]]  ;;  %v472_v17 = vadd.f32 %v471_v63, %v469_v8 }
  0xc6   :  { %v476_v2 = vstv %s1905_s5  ;;  %s1493_s12 = sld [smem:[#allocation8 + $0x306]]  ;;  %v452_v16 = vadd.f32 %v451_v57, %v449_v7  ;;  %v525_v57 = vstv %s1405_s23  ;;  %v534_v7 = vstv %s1422_s3 }
  0xc7   :  { %s1909_s1 = sld [smem:[#allocation28_spill]]  ;;  %v477_v14 = vmul.f32 %v476_v2, %v1375_v22  ;;  %v475_v24 = vadd.f32 %v474_v9, %v472_v17  ;;  %v526_v63 = vmul.f32 %v525_v57, %v1311_v38  ;;  %v529_v2 = vmul.f32 %v528_v58, %v1313_v39 }
  0xc8   :  { %v479_v5 = vstv %s1906_s30  ;;  %s1499_s17 = sld [smem:[#allocation8 + $0x307]]  ;;  %v455_v23 = vadd.f32 %v454_v4, %v452_v16  ;;  %v518_v17 = vmul.f32 %v517_v55, %v1407_v46 }
  0xc9   :  { %s1911_s13 = sld [smem:[#allocation24_spill]]  ;;  %v480_v18 = vmul.f32 %v479_v5, %v1385_v29  ;;  %v478_v34 = vadd.f32 %v477_v14, %v475_v24  ;;  %v512_v5 = vmul.f32 %v511_v50, %v1385_v29  ;;  %v527_v9 = vadd.f32 %v526_v63, %v524_v56 }
  0xca   :  { %1907 = sst [smem:[#allocation31_spill]] %s1489_s28  ;;  %v1540_v43 = vadd.f32 %v456_v11, %v455_v23  ;;  %v540_v11 = vstv %s1432_s25  ;;  %v426_v14 = vmax.f32 %v1535_v41, 0.0  ;;  %v543_v23 = vstv %s1437_s26 }
  0xcb   :  { %s1912_s0 = sld [smem:[#allocation29_spill]]  ;;  %v491_v15 = vstv %s1908_s10  ;;  %v481_v44 = vadd.f32 %v480_v18, %v478_v34  ;;  %v555_v24 = vstv %s1456_s16  ;;  %v560_v34 = vstv %s1475_s29 }
  0xcc   :  { %s1913_s2 = sld [smem:[#allocation26_spill]]  ;;  %v492_v19 = vmul.f32 %v491_v15, %v1296_v28  ;;  %v458_v15 = vmax.f32 %v1540_v43, 0.0  ;;  %v550_v56 = vmul.f32 %v549_v32, %v1407_v46 }
  0xcd   :  { %s1503_s28 = sld [smem:[#allocation8 + $0x308]]  ;;  %v482_v0 = vstv %s1909_s1 }
  0xce   :  { %1910 = sst [smem:[#allocation34_spill]] %s1499_s17  ;;  %v483_v27 = vmul.f32 %v482_v0, %v1387_v30 }
  0xcf   :  { %s1508_s5 = sld [smem:[#allocation8 + $0x309]]  ;;  %v485_v1 = vstv %s1911_s13 }
  0xd0   :  { %s1914_s30 = sld [smem:[#allocation27_spill]]  ;;  %v486_v42 = vmul.f32 %v485_v1, %v1407_v46  ;;  %v484_v52 = vadd.f32 %v483_v27, %v481_v44  ;;  %v530_v1 = vadd.f32 %v529_v2, %v527_v9  ;;  %v546_v27 = vstv %s1442_s15 }
  0xd1   :  { %s1915_s18 = sld [smem:[#allocation30_spill]]  ;;  %v493_v20 = vstv %s1912_s0  ;;  %v561_v44 = vmul.f32 %v560_v34, %v1313_v39  ;;  %v547_v55 = vmul.f32 %v546_v27, %v1387_v30 }
  0xd2   :  { %s1512_s17 = sld [smem:[#allocation8 + $0x380]]  ;;  %v496_v21 = vstv %s1913_s2  ;;  %v494_v25 = vmul.f32 %v493_v20, %v1311_v38  ;;  %v487_v60 = vadd.f32 %v486_v42, %v484_v52  ;;  %v538_v20 = vmul.f32 %v537_v10, %v1361_v13 }
  0xd3   :  { %s1518_s27 = sld [smem:[#allocation8 + $0x381]]  ;;  %v497_v26 = vmul.f32 %v496_v21, %v1313_v39  ;;  %v541_v21 = vmul.f32 %v540_v11, %v1375_v22 }
  0xd4   :  { %s1522_s10 = sld [smem:[#allocation9 + $0x3]]  ;;  %v495_v35 = vadd.f32 %v494_v25, %v492_v19  ;;  %v535_v19 = vmul.f32 %v534_v7, %v1359_v12 }
  0xd5   :  { %s1528_s1 = sld [smem:[#allocation8 + $0x382]]  ;;  %v581_v10 = vstv %s1508_s5 }
  0xd6   :  { %v499_v31 = vstv %s1914_s30  ;;  %s1532_s13 = sld [smem:[#allocation8 + $0x383]]  ;;  %v498_v45 = vadd.f32 %v497_v26, %v495_v35  ;;  %v533_v26 = vadd.f32 %v532_v6, %v530_v1  ;;  %v563_v35 = vstv %s1480_s6 }
  0xd7   :  { %v505_v33 = vstv %s1915_s18  ;;  %v500_v36 = vmul.f32 %v499_v31, %v1343_v62  ;;  %s1916_s0 = sld [smem:[#allocation33_spill]]  ;;  %v556_v31 = vmul.f32 %v555_v24, %v1296_v28 }
  0xd8   :  { %s1538_s21 = sld [smem:[#allocation8 + $0x384]]  ;;  %v506_v48 = vmul.f32 %v505_v33, %v1361_v13  ;;  %v557_v33 = vstv %s1471_s4  ;;  %v536_v37 = vadd.f32 %v535_v19, %v533_v26 }
  0xd9   :  { %s1543_s11 = sld [smem:[#allocation8 + $0x385]]  ;;  %v501_v53 = vadd.f32 %v500_v36, %v498_v45  ;;  %v558_v42 = vmul.f32 %v557_v33, %v1311_v38  ;;  %v589_v11 = vstv %s1518_s27 }
  0xda   :  { %s1549_s2 = sld [smem:[#allocation8 + $0x386]]  ;;  %v488_v4 = vstv %s1522_s10  ;;  %v539_v50 = vadd.f32 %v538_v20, %v536_v37  ;;  %v590_v19 = vmul.f32 %v589_v11, %v1311_v38 }
  0xdb   :  { %s1553_s30 = sld [smem:[#allocation8 + $0x387]]  ;;  %v504_v61 = vadd.f32 %v503_v47, %v501_v53  ;;  %v1581_v18 = vadd.f32 %v488_v4, %v487_v60  ;;  %v544_v47 = vmul.f32 %v543_v23, %v1385_v29  ;;  %v559_v51 = vadd.f32 %v558_v42, %v556_v31 }
  0xdc   :  { %s1559_s18 = sld [smem:[#allocation8 + $0x388]]  ;;  %v572_v53 = vstv %s1493_s12  ;;  %v542_v59 = vadd.f32 %v541_v21, %v539_v50 }
  0xdd   :  { %v514_v54 = vstv %s1916_s0  ;;  %s1563_s7 = sld [smem:[#allocation9 + $0x4]]  ;;  %v507_v8 = vadd.f32 %v506_v48, %v504_v61  ;;  %v564_v48 = vmul.f32 %v563_v35, %v1343_v62  ;;  %v562_v60 = vadd.f32 %v561_v44, %v559_v51 }
  0xde   :  { %s1569_s24 = sld [smem:[#allocation8 + $0x389]]  ;;  %v515_v16 = vmul.f32 %v514_v54, %v1387_v30  ;;  %v490_v54 = vmax.f32 %v1581_v18, 0.0  ;;  %v573_v2 = vmul.f32 %v572_v53, %v1375_v22  ;;  %v545_v6 = vadd.f32 %v544_v47, %v542_v59 }
  0xdf   :  { %s1573_s9 = sld [smem:[#allocation9 + $0x5]]  ;;  %v510_v0 = vadd.f32 %v509_v49, %v507_v8  ;;  %v566_v49 = vstv %s1484_s8  ;;  %v565_v7 = vadd.f32 %v564_v48, %v562_v60  ;;  %v578_v8 = vstv %s1503_s28 }
  0xe0   :  { %s1579_s23 = sld [smem:[#allocation8 + $0x400]]  ;;  %v567_v61 = vmul.f32 %v566_v49, %v1359_v12  ;;  %v598_v24 = vstv %s1538_s21  ;;  %v604_v32 = vstv %s1549_s2  ;;  %v579_v34 = vmul.f32 %v578_v8, %v1387_v30 }
  0xe1   :  { %s1584_s20 = sld [smem:[#allocation8 + $0x401]]  ;;  %v513_v25 = vadd.f32 %v512_v5, %v510_v0  ;;  %v587_v5 = vstv %s1512_s17  ;;  %v548_v0 = vadd.f32 %v547_v55, %v545_v6  ;;  %v582_v35 = vmul.f32 %v581_v10, %v1407_v46 }
  0xe2   :  { %s1590_s14 = sld [smem:[#allocation8 + $0x402]]  ;;  %v588_v9 = vmul.f32 %v587_v5, %v1296_v28  ;;  %v568_v1 = vadd.f32 %v567_v61, %v565_v7  ;;  %v599_v44 = vmul.f32 %v598_v24, %v1359_v12  ;;  %v605_v47 = vmul.f32 %v604_v32, %v1375_v22 }
  0xe3   :  { %s1594_s3 = sld [smem:[#allocation8 + $0x403]]  ;;  %v516_v36 = vadd.f32 %v515_v16, %v513_v25  ;;  %v520_v45 = vstv %s1563_s7  ;;  %v592_v16 = vstv %s1528_s1  ;;  %v601_v25 = vstv %s1543_s11 }
  0xe4   :  { %s1917_s22 = sld [smem:[#allocation31_spill]]  ;;  %v593_v20 = vmul.f32 %v592_v16, %v1313_v39  ;;  %v591_v27 = vadd.f32 %v590_v19, %v588_v9  ;;  %v551_v33 = vadd.f32 %v550_v56, %v548_v0  ;;  %v607_v48 = vstv %s1553_s30 }
  0xe5   :  { %s1600_s25 = sld [smem:[#allocation8 + $0x404]]  ;;  %v552_v57 = vstv %s1573_s9  ;;  %v519_v58 = vadd.f32 %v518_v17, %v516_v36  ;;  %v595_v17 = vstv %s1532_s13  ;;  %v610_v49 = vstv %s1559_s18 }
  0xe6   :  { %s1604_s26 = sld [smem:[#allocation8 + $0x405]]  ;;  %v596_v31 = vmul.f32 %v595_v17, %v1343_v62  ;;  %v594_v42 = vadd.f32 %v593_v20, %v591_v27  ;;  %v619_v50 = vstv %s1579_s23  ;;  %v613_v53 = vstv %s1569_s24 }
  0xe7   :  { %s1610_s15 = sld [smem:[#allocation8 + $0x406]]  ;;  %v1645_v21 = vadd.f32 %v520_v45, %v519_v58  ;;  %v602_v45 = vmul.f32 %v601_v25, %v1361_v13  ;;  %v620_v55 = vmul.f32 %v619_v50, %v1296_v28  ;;  %v1675_v56 = vadd.f32 %v552_v57, %v551_v33 }
  0xe8   :  { %s1918_s19 = sld [smem:[#allocation34_spill]]  ;;  %v621_v58 = vstv %s1584_s20  ;;  %v624_v59 = vstv %s1590_s14  ;;  %v608_v57 = vmul.f32 %v607_v48, %v1385_v29  ;;  %v611_v17 = vmul.f32 %v610_v49, %v1387_v30 }
  0xe9   :  { %s1614_s16 = sld [smem:[#allocation9 + $0x6]]  ;;  %v627_v60 = vstv %s1594_s3  ;;  %v522_v5 = vmax.f32 %v1645_v21, 0.0  ;;  %v554_v16 = vmax.f32 %v1675_v56, 0.0  ;;  %v614_v0 = vmul.f32 %v613_v53, %v1407_v46 }
  0xea   :  { %v569_v52 = vstv %s1917_s22  ;;  %s1620_s4 = sld [smem:[#allocation8 + $0x407]]  ;;  %v628_v6 = vmul.f32 %v627_v60, %v1343_v62 }
  0xeb   :  { %s1623_s29 = sld [smem:[#allocation8 + $0x408]]  ;;  %v570_v63 = vmul.f32 %v569_v52, %v1361_v13  ;;  %v597_v52 = vadd.f32 %v596_v31, %v594_v42  ;;  %v630_v7 = vstv %s1600_s25 }
  0xec   :  { %s1629_s6 = sld [smem:[#allocation8 + $0x409]]  ;;  %v633_v10 = vstv %s1604_s26  ;;  %v631_v24 = vmul.f32 %v630_v7, %v1359_v12 }
  0xed   :  { %s1633_s8 = sld [smem:[#allocation8 + $0x480]]  ;;  %v571_v26 = vadd.f32 %v570_v63, %v568_v1  ;;  %v600_v63 = vadd.f32 %v599_v44, %v597_v52  ;;  %v636_v11 = vstv %s1610_s15  ;;  %v634_v25 = vmul.f32 %v633_v10, %v1361_v13 }
  0xee   :  { %v575_v4 = vstv %s1918_s19  ;;  %s1639_s12 = sld [smem:[#allocation8 + $0x481]] }
  0xef   :  { %s1643_s28 = sld [smem:[#allocation8 + $0x482]]  ;;  %v576_v23 = vmul.f32 %v575_v4, %v1385_v29  ;;  %v584_v36 = vstv %s1614_s16  ;;  %v574_v37 = vadd.f32 %v573_v2, %v571_v26  ;;  %v622_v2 = vmul.f32 %v621_v58, %v1311_v38 }
  0xf0   :  { %s1650_s17 = sld [smem:[#allocation8 + $0x483]]  ;;  %v625_v4 = vmul.f32 %v624_v59, %v1313_v39  ;;  %v603_v8 = vadd.f32 %v602_v45, %v600_v63  ;;  %v637_v26 = vmul.f32 %v636_v11, %v1375_v22  ;;  %v639_v27 = vstv %s1620_s4 }
  0xf1   :  { %s1654_s5 = sld [smem:[#allocation9 + $0x7]]  ;;  %v577_v51 = vadd.f32 %v576_v23, %v574_v37  ;;  %v623_v9 = vadd.f32 %v622_v2, %v620_v55 }
  0xf2   :  { %s1659_s27 = sld [smem:[#allocation8 + $0x484]]  ;;  %v606_v20 = vadd.f32 %v605_v47, %v603_v8  ;;  %v645_v37 = vstv %s1629_s6 }
  0xf3   :  { %s1663_s10 = sld [smem:[#allocation8 + $0x485]]  ;;  %v580_v61 = vadd.f32 %v579_v34, %v577_v51  ;;  %v626_v23 = vadd.f32 %v625_v4, %v623_v9  ;;  %v651_v31 = vstv %s1633_s8  ;;  %v642_v34 = vstv %s1623_s29 }
  0xf4   :  { %s1669_s1 = sld [smem:[#allocation8 + $0x486]]  ;;  %v609_v32 = vadd.f32 %v608_v57, %v606_v20  ;;  %v653_v42 = vstv %s1639_s12  ;;  %v640_v51 = vmul.f32 %v639_v27, %v1385_v29  ;;  %v646_v60 = vmul.f32 %v645_v37, %v1407_v46 }
  0xf5   :  { %s1673_s13 = sld [smem:[#allocation8 + $0x487]]  ;;  %v583_v19 = vadd.f32 %v582_v35, %v580_v61  ;;  %v629_v33 = vadd.f32 %v628_v6, %v626_v23  ;;  %v652_v35 = vmul.f32 %v651_v31, %v1296_v28  ;;  %v656_v44 = vstv %s1643_s28 }
  0xf6   :  { %s1680_s0 = sld [smem:[#allocation8 + $0x488]]  ;;  %v659_v45 = vstv %s1650_s17  ;;  %v612_v47 = vadd.f32 %v611_v17, %v609_v32  ;;  %v654_v49 = vmul.f32 %v653_v42, %v1311_v38  ;;  %v657_v50 = vmul.f32 %v656_v44, %v1313_v39 }
  0xf7   :  { %s1684_s21 = sld [smem:[#allocation8 + $0x489]]  ;;  %v616_v1 = vstv %s1654_s5  ;;  %v632_v48 = vadd.f32 %v631_v24, %v629_v33  ;;  %v1727_v28 = vadd.f32 %v584_v36, %v583_v19  ;;  %v660_v38 = vmul.f32 %v659_v45, %v1343_v62  ;;  %s1078_s5 = smov [#allocation15]  }
  0xf8   :  { %s1690_s11 = sld [smem:[#allocation9 + $0x8]]  ;;  %v662_v52 = vstv %s1659_s27  ;;  %v655_v58 = vadd.f32 %v654_v49, %v652_v35  ;;  %v615_v39 = vadd.f32 %v614_v0, %v612_v47  ;;  %v643_v36 = vmul.f32 %v642_v34, %v1387_v30  ;;  %s752_s27 = sshll.u32 %s1078_s5, 4  ;;  %s753_s27 = int_to_ptr.vmem [resolvable:$true] %s752_s27 }
  0xf9   :  { %s1694_s2 = sld [smem:[#allocation9 + $0x9]]  ;;  %v665_v53 = vstv %s1663_s10  ;;  %v635_v55 = vadd.f32 %v634_v25, %v632_v48  ;;  %v663_v4 = vmul.f32 %v662_v52, %v1359_v12 }
  0xfa   :  { %s1700_s30 = sld [smem:[#allocation11]]  ;;  %v668_v59 = vstv %s1669_s1  ;;  %v658_v2 = vadd.f32 %v657_v50, %v655_v58  ;;  %v666_v62 = vmul.f32 %v665_v53, %v1361_v13  ;;  %v1758_v12 = vadd.f32 %v616_v1, %v615_v39 }
  0xfb   :  { %s1703_s18 = sld [smem:[#allocation11 + $0x1]]  ;;  %v638_v63 = vadd.f32 %v637_v26, %v635_v55  ;;  %v669_v57 = vmul.f32 %v668_v59, %v1375_v22  ;;  %v671_v6 = vstv %s1673_s13  ;;  %v586_v1 = vmax.f32 %v1727_v28, 0.0 }
  0xfc   :  { %s1709_s7 = sld [smem:[#allocation11 + $0x2]]  ;;  %v674_v7 = vstv %s1680_s0  ;;  %v661_v10 = vadd.f32 %v660_v38, %v658_v2  ;;  %v672_v25 = vmul.f32 %v671_v6, %v1385_v29  ;;  %v618_v35 = vmax.f32 %v1758_v12, 0.0 }
  0xfd   :  { %s1713_s24 = sld [smem:[#allocation11 + $0x3]]  ;;  %v641_v9 = vadd.f32 %v640_v51, %v638_v63  ;;  %v677_v11 = vstv %s1684_s21  ;;  %v675_v37 = vmul.f32 %v674_v7, %v1387_v30  ;;  %s1920_s21 = smov 8  }
  0xfe   :  { %s1719_s9 = sld [smem:[#allocation11 + $0x4]]  ;;  %v648_v61 = vstv %s1690_s11  ;;  %v664_v20 = vadd.f32 %v663_v4, %v661_v10  ;;  %v678_v42 = vmul.f32 %v677_v11, %v1407_v46  ;;  %s1921_s11 = smov 128  }
  0xff   :  { %s1723_s23 = sld [smem:[#allocation11 + $0x5]]  ;;  %v644_v19 = vadd.f32 %v643_v36, %v641_v9  ;;  %v680_v3 = vstv %s1694_s2 }
 0x100   :  { %s1732_s20 = sld [smem:[#allocation11 + $0x6]]  ;;  %v683_v8 = vstv %s1700_s30  ;;  %v667_v32 = vadd.f32 %v666_v62, %v664_v20 }
 0x101   :  { %s1736_s14 = sld [smem:[#allocation11 + $0x80]]  ;;  %v684_v17 = vmul.f32 %v683_v8, %v394_v40  ;;  %v685_v13 = vstv %s1703_s18  ;;  %v647_v31 = vadd.f32 %v646_v60, %v644_v19 }
 0x102   :  { %s1741_s3 = sld [smem:[#allocation11 + $0x81]]  ;;  %v688_v0 = vstv %s1709_s7  ;;  %v686_v23 = vmul.f32 %v685_v13, %v426_v14  ;;  %v670_v45 = vadd.f32 %v669_v57, %v667_v32 }
 0x103   :  { %s1745_s22 = sld [smem:[#allocation11 + $0x82]]  ;;  %v691_v22 = vstv %s1713_s24  ;;  %v689_v24 = vmul.f32 %v688_v0, %v458_v15  ;;  %v649_v44 = vadd.f32 %v648_v61, %v647_v31 }
 0x104   :  { %s1751_s25 = sld [smem:[#allocation11 + $0x7]]  ;;  %v692_v26 = vmul.f32 %v691_v22, %v490_v54  ;;  %v694_v27 = vstv %s1719_s9  ;;  %v687_v33 = vadd.f32 %v686_v23, %v684_v17  ;;  %v673_v28 = vadd.f32 %v672_v25, %v670_v45 }
 0x105   :  { %s1756_s26 = sld [smem:[#allocation11 + $0x83]]  ;;  %v697_v34 = vstv %s1723_s23  ;;  %v695_v48 = vmul.f32 %v694_v27, %v522_v5  ;;  %v650_v39 = vmax.f32 %v649_v44, 0.0 }
 0x106   :  { %s1763_s15 = sld [smem:[#allocation11 + $0x84]]  ;;  %v700_v29 = vstv %s1732_s20  ;;  %v690_v47 = vadd.f32 %v689_v24, %v687_v33  ;;  %v698_v49 = vmul.f32 %v697_v34, %v554_v16  ;;  %v676_v36 = vadd.f32 %v675_v37, %v673_v28 }
 0x107   :  { %s1769_s19 = sld [smem:[#allocation11 + $0x8]]  ;;  %v715_v50 = vstv %s1736_s14  ;;  %v701_v52 = vmul.f32 %v700_v29, %v586_v1 }
 0x108   :  { %s1776_s16 = sld [smem:[#allocation11 + $0x85]]  ;;  %v717_v30 = vstv %s1741_s3  ;;  %v693_v51 = vadd.f32 %v692_v26, %v690_v47  ;;  %v716_v53 = vmul.f32 %v715_v50, %v394_v40  ;;  %v679_v43 = vadd.f32 %v678_v42, %v676_v36 }
 0x109   :  { %s1783_s4 = sld [smem:[#allocation11 + $0x86]]  ;;  %v720_v46 = vstv %s1745_s22  ;;  %v718_v58 = vmul.f32 %v717_v30, %v426_v14 }
 0x10a   :  { %s1787_s29 = sld [smem:[#allocation11 + $0x9]]  ;;  %v703_v55 = vstv %s1751_s25  ;;  %v721_v38 = vmul.f32 %v720_v46, %v458_v15  ;;  %v696_v60 = vadd.f32 %v695_v48, %v693_v51  ;;  %v681_v57 = vadd.f32 %v680_v3, %v679_v43 }
 0x10b   :  { %s1794_s6 = sld [smem:[#allocation11 + $0x87]]  ;;  %v723_v59 = vstv %s1756_s26  ;;  %v719_v63 = vadd.f32 %v718_v58, %v716_v53  ;;  %v704_v15 = vmul.f32 %v703_v55, %v618_v35 }
 0x10c   :  { %s1804_s8 = sld [smem:[#allocation11 + $0x88]]  ;;  %v726_v61 = vstv %s1763_s15  ;;  %v724_v41 = vmul.f32 %v723_v59, %v490_v54  ;;  %v699_v14 = vadd.f32 %v698_v49, %v696_v60  ;;  %v682_v10 = vmax.f32 %v681_v57, 0.0 }
 0x10d   :  { %s1807_s12 = sld [smem:[#allocation12]]  ;;  %v706_v40 = vstv %s1769_s19  ;;  %v722_v4 = vadd.f32 %v721_v38, %v719_v63  ;;  %v727_v62 = vmul.f32 %v726_v61, %v522_v5 }
 0x10e   :  { %s1813_s28 = sld [smem:[#allocation11 + $0x89]]  ;;  %v729_v2 = vstv %s1776_s16  ;;  %v702_v6 = vadd.f32 %v701_v52, %v699_v14  ;;  %v707_v7 = vmul.f32 %v706_v40, %v650_v39 }
 0x10f   :  { %v732_v8 = vstv %s1783_s4  ;;  %v725_v18 = vadd.f32 %v724_v41, %v722_v4  ;;  %v730_v54 = vmul.f32 %v729_v2, %v554_v16  ;;  %s926_s17 = sld [smem:[#allocation12 + $0x1]] }
 0x110   :  { %v709_v9 = vstv %s1787_s29  ;;  %v705_v11 = vadd.f32 %v704_v15, %v702_v6  ;;  %v733_v13 = vmul.f32 %v732_v8, %v586_v1  ;;  %s1919_s13 = sld [smem:[#allocation47_spill]] }
 0x111   :  { %v735_v17 = vstv %s1794_s6  ;;  %v728_v12 = vadd.f32 %v727_v62, %v725_v18  ;;  %v710_v5 = vmul.f32 %v709_v9, %v682_v10 }
 0x112   :  { %v708_v21 = vadd.f32 %v707_v7, %v705_v11  ;;  %v738_v0 = vstv %s1804_s8  ;;  %v736_v20 = vmul.f32 %v735_v17, %v618_v35 }
 0x113   :  { %v712_v22 = vstv %s1807_s12  ;;  %v731_v19 = vadd.f32 %v730_v54, %v728_v12  ;;  %v739_v26 = vmul.f32 %v738_v0, %v650_v39 }
 0x114   :  { %v711_v23 = vadd.f32 %v710_v5, %v708_v21  ;;  %v741_v24 = vstv %s1813_s28 }
 0x115   :  { %v734_v25 = vadd.f32 %v733_v13, %v731_v19  ;;  %v742_v56 = vmul.f32 %v741_v24, %v682_v10  ;;  %v744_v32 = vstv %s926_s17 }
 0x116   :  { %v713_v27 = vadd.f32 %v712_v22, %v711_v23  ;;  %s754_s0 = sshll.u32 %s1919_s13, 4  ;;  %s755_s0 = int_to_ptr.hbm [resolvable:$true] %s754_s0 }
 0x117   :  { %v737_v31 = vadd.f32 %v736_v20, %v734_v25 }
 0x118   :  { %714 = vst [vmem:[#allocation15] sm:$0xff] %v713_v27 }
 0x119   :  { %v740_v16 = vadd.f32 %v739_v26, %v737_v31 }
 0x11b   :  { %v743_v1 = vadd.f32 %v742_v56, %v740_v16 }
 0x11d   :  { %v745_v33 = vadd.f32 %v744_v32, %v743_v1 }
 0x11f   :  { %747 = vst [vmem:[#allocation15 + $0x8] sm:$0xff] %v745_v33 }
 0x120   :  { %760 = dma.vmem_to_hbm [thread:$0]  %s753_s27, 256, %s755_s0, [#allocation4], %s1921_s11, %s1921_s11, %s1920_s21  }
 0x121   :  { %1067 = dma.done.wait [#allocation4], 256  }
 0x122   :  { %1068 = vsyncadd [#allocation4], 4294967040 }
 0x123   :  { %765 = vsyncpa [#allocation3], 1 }
 0x124   :  { %766 = vsyncpa [#allocation4], 1 }
 0x125   :  { %767 = vsyncpa [#allocation5], 1 }
 0x126   :  { %768 = vsyncpa [#allocation7], 1 }
 0x127   :  { %769 = vsyncpa [#allocation10], 1 }
 0x128   :  { %770 = vsyncpa [#allocation13], 1 }

</bundles_post_ra>
